<compile_context>
chip_gen: v7x
topology: tpu7x:2x2x1
jax: 0.10.0
libtpu: 0.0.40
codegen_flags: <defaults>
</compile_context>

<pallas_src>
import jax
import jax.numpy as jnp
from jax.experimental import pallas as pl
from jax.experimental.pallas import tpu as pltpu

_ROWS = 8     # batch rows per grid step (sublane-aligned block height)
_LANES = 128  # pad S up to a multiple of this (lane-dense stores)


def _prefix_count_kernel(x_ref, xcol_ref, o_ref):
    # x_ref:    (ROWS, S)    int32   token ids, sequence on lanes
    # xcol_ref: (ROWS, S, 1) int32   same tokens, sequence on sublanes
    # o_ref:    (ROWS, S)    float32 prefix counts
    rows, S = x_ref.shape

    # Hoisted once per grid step: inclusive-prefix mask.
    # tri[t, s] = True iff t <= s  (t = key pos on sublanes, s = query pos on lanes)
    t_idx = jax.lax.broadcasted_iota(jnp.int32, (S, S), 0)
    s_idx = jax.lax.broadcasted_iota(jnp.int32, (S, S), 1)
    tri = t_idx <= s_idx                                       # (S, S) bool

    def body(r, carry):
        x_row = x_ref[pl.ds(r, 1), :]                          # (1, S): x[s] on lanes
        x_col = xcol_ref[r]                                    # (S, 1): x[t] on sublanes
        eq = x_col == x_row                                    # (S, S) bool, VPU compare
        # counts[s] = #{t <= s : x[t] == x[s]}; sublane reduce -> lane-dense (1, S)
        counts = jnp.sum((eq & tri).astype(jnp.float32), axis=0, keepdims=True)
        o_ref[pl.ds(r, 1), :] = counts
        return carry

    jax.lax.fori_loop(0, rows, body, 0, unroll=True)


def prefix_sum_counts(x, d_vocab):
    """Pallas equivalent of PrefixSumCounts(d_vocab).forward(x).

    x: (B, S) integer token ids. Returns (B, S, 1) float32 counts.
    (d_vocab only matters for torch's out-of-range check; the counts
    themselves do not depend on it.)
    """
    del d_vocab  # not needed by the direct-compare formulation
    B, S = x.shape
    b_pad = ((B + _ROWS - 1) // _ROWS) * _ROWS
    s_pad = ((S + _LANES - 1) // _LANES) * _LANES

    x_p = jnp.zeros((b_pad, s_pad), jnp.int32).at[:B, :S].set(x.astype(jnp.int32))
    x_col = x_p[..., None]                                     # (b_pad, s_pad, 1)

    out = pl.pallas_call(
        _prefix_count_kernel,
        out_shape=jax.ShapeDtypeStruct((b_pad, s_pad), jnp.float32),
        grid_spec=pltpu.PrefetchScalarGridSpec(
            num_scalar_prefetch=0,
            grid=(b_pad // _ROWS,),                            # 8 rows per grid step
            in_specs=[
                pl.BlockSpec((_ROWS, s_pad), lambda b: (b, 0)),
                pl.BlockSpec((_ROWS, s_pad, 1), lambda b: (b, 0, 0)),
            ],
            out_specs=pl.BlockSpec((_ROWS, s_pad), lambda b: (b, 0)),
        ),
        compiler_params=pltpu.CompilerParams(
            dimension_semantics=("parallel",)),
    )(x_p, x_col)

    return out[:B, :S][..., None]                              # (B, S, 1) float32


def _reference(x, d_vocab):
    # Pure-JAX transcription of the PyTorch forward for validation.
    one_hot = jax.nn.one_hot(x, d_vocab, dtype=jnp.float32)    # (B, S, V)
    cumsum = jnp.cumsum(one_hot, axis=1)                       # (B, S, V)
    idx = x[..., None].astype(jnp.int32)                       # (B, S, 1)
    return jnp.take_along_axis(cumsum, idx, axis=2).astype(jnp.float32)


if __name__ == "__main__":
    B, S, d_vocab = 2, 16, 8
    key = jax.random.PRNGKey(0)
    x = jax.random.randint(key, (B, S), 0, d_vocab, dtype=jnp.int32)

    out = jax.block_until_ready(prefix_sum_counts(x, d_vocab))
    ref = _reference(x, d_vocab)

    assert out.shape == (B, S, 1), out.shape
    assert out.dtype == jnp.float32, out.dtype
    assert jnp.allclose(out, ref), (out[..., 0], ref[..., 0])
    print("KERNEL_OK")
</pallas_src>

<mosaic_0001>
module attributes {stable_mosaic.version = 11 : i64} {
  func.func @_prefix_count_kernel(%arg0: i32, %arg1: memref<8x128xi32, #tpu.memory_space<vmem>>, %arg2: memref<8x128x1xi32, #tpu.memory_space<vmem>>, %arg3: memref<8x128xf32, #tpu.memory_space<vmem>>) attributes {dimension_semantics = [#tpu.dimension_semantics<parallel>], iteration_bounds = array<i64: 1>, scalar_prefetch = 0 : i64, scratch_operands = 0 : i64, tpu.core_type = #tpu.core_type<tc>, window_params = [{transform_indices = @transform_0, window_bounds = array<i64: 8, 128>}, {transform_indices = @transform_1, window_bounds = array<i64: 8, 128, 1>}, {transform_indices = @transform_2, window_bounds = array<i64: 8, 128>}]} {
    %0 = tpu.iota {dimensions = array<i32: 0>} : vector<128x128xi32>
    %1 = tpu.iota {dimensions = array<i32: 1>} : vector<128x128xi32>
    %2 = arith.cmpi sle, %0, %1 : vector<128x128xi32>
    %c0_i32 = arith.constant 0 : i32
    %3 = arith.index_cast %c0_i32 : i32 to index
    %c0 = arith.constant 0 : index
    %4 = vector.load %arg1[%3, %c0] : memref<8x128xi32, #tpu.memory_space<vmem>>, vector<1x128xi32>
    %5 = arith.index_cast %c0_i32 : i32 to index
    %c0_0 = arith.constant 0 : index
    %c0_1 = arith.constant 0 : index
    %6 = vector.load %arg2[%5, %c0_0, %c0_1] : memref<8x128x1xi32, #tpu.memory_space<vmem>>, vector<1x128x1xi32>
    %7 = vector.shape_cast %6 : vector<1x128x1xi32> to vector<128x1xi32>
    %8 = vector.broadcast %7 : vector<128x1xi32> to vector<128x128xi32>
    %9 = vector.broadcast %4 : vector<1x128xi32> to vector<128x128xi32>
    %10 = arith.cmpi eq, %8, %9 : vector<128x128xi32>
    %11 = arith.andi %10, %2 : vector<128x128xi1>
    %12 = arith.extui %11 : vector<128x128xi1> to vector<128x128xi32>
    %13 = arith.sitofp %12 : vector<128x128xi32> to vector<128x128xf32>
    %cst = arith.constant dense<0.000000e+00> : vector<128xf32>
    %14 = vector.multi_reduction <add>, %13, %cst [0] : vector<128x128xf32> to vector<128xf32>
    %15 = vector.shape_cast %14 : vector<128xf32> to vector<1x128xf32>
    %16 = arith.index_cast %c0_i32 : i32 to index
    %c0_2 = arith.constant 0 : index
    %17 = vector.load %arg3[%16, %c0_2] : memref<8x128xf32, #tpu.memory_space<vmem>>, vector<1x128xf32>
    tpu.vector_store %arg3[%16, %c0_2], %15 {strides = array<i32>} : memref<8x128xf32, #tpu.memory_space<vmem>>, vector<1x128xf32>,
    %c1_i32 = arith.constant 1 : i32
    %18 = arith.index_cast %c1_i32 : i32 to index
    %c0_3 = arith.constant 0 : index
    %19 = vector.load %arg1[%18, %c0_3] : memref<8x128xi32, #tpu.memory_space<vmem>>, vector<1x128xi32>
    %20 = arith.index_cast %c1_i32 : i32 to index
    %c0_4 = arith.constant 0 : index
    %c0_5 = arith.constant 0 : index
    %21 = vector.load %arg2[%20, %c0_4, %c0_5] : memref<8x128x1xi32, #tpu.memory_space<vmem>>, vector<1x128x1xi32>
    %22 = vector.shape_cast %21 : vector<1x128x1xi32> to vector<128x1xi32>
    %23 = vector.broadcast %22 : vector<128x1xi32> to vector<128x128xi32>
    %24 = vector.broadcast %19 : vector<1x128xi32> to vector<128x128xi32>
    %25 = arith.cmpi eq, %23, %24 : vector<128x128xi32>
    %26 = arith.andi %25, %2 : vector<128x128xi1>
    %27 = arith.extui %26 : vector<128x128xi1> to vector<128x128xi32>
    %28 = arith.sitofp %27 : vector<128x128xi32> to vector<128x128xf32>
    %cst_6 = arith.constant dense<0.000000e+00> : vector<128xf32>
    %29 = vector.multi_reduction <add>, %28, %cst_6 [0] : vector<128x128xf32> to vector<128xf32>
    %30 = vector.shape_cast %29 : vector<128xf32> to vector<1x128xf32>
    %31 = arith.index_cast %c1_i32 : i32 to index
    %c0_7 = arith.constant 0 : index
    %32 = vector.load %arg3[%31, %c0_7] : memref<8x128xf32, #tpu.memory_space<vmem>>, vector<1x128xf32>
    tpu.vector_store %arg3[%31, %c0_7], %30 {strides = array<i32>} : memref<8x128xf32, #tpu.memory_space<vmem>>, vector<1x128xf32>,
    %c2_i32 = arith.constant 2 : i32
    %33 = arith.index_cast %c2_i32 : i32 to index
    %c0_8 = arith.constant 0 : index
    %34 = vector.load %arg1[%33, %c0_8] : memref<8x128xi32, #tpu.memory_space<vmem>>, vector<1x128xi32>
    %35 = arith.index_cast %c2_i32 : i32 to index
    %c0_9 = arith.constant 0 : index
    %c0_10 = arith.constant 0 : index
    %36 = vector.load %arg2[%35, %c0_9, %c0_10] : memref<8x128x1xi32, #tpu.memory_space<vmem>>, vector<1x128x1xi32>
    %37 = vector.shape_cast %36 : vector<1x128x1xi32> to vector<128x1xi32>
    %38 = vector.broadcast %37 : vector<128x1xi32> to vector<128x128xi32>
    %39 = vector.broadcast %34 : vector<1x128xi32> to vector<128x128xi32>
    %40 = arith.cmpi eq, %38, %39 : vector<128x128xi32>
    %41 = arith.andi %40, %2 : vector<128x128xi1>
    %42 = arith.extui %41 : vector<128x128xi1> to vector<128x128xi32>
    %43 = arith.sitofp %42 : vector<128x128xi32> to vector<128x128xf32>
    %cst_11 = arith.constant dense<0.000000e+00> : vector<128xf32>
    %44 = vector.multi_reduction <add>, %43, %cst_11 [0] : vector<128x128xf32> to vector<128xf32>
    %45 = vector.shape_cast %44 : vector<128xf32> to vector<1x128xf32>
    %46 = arith.index_cast %c2_i32 : i32 to index
    %c0_12 = arith.constant 0 : index
    %47 = vector.load %arg3[%46, %c0_12] : memref<8x128xf32, #tpu.memory_space<vmem>>, vector<1x128xf32>
    tpu.vector_store %arg3[%46, %c0_12], %45 {strides = array<i32>} : memref<8x128xf32, #tpu.memory_space<vmem>>, vector<1x128xf32>,
    %c3_i32 = arith.constant 3 : i32
    %48 = arith.index_cast %c3_i32 : i32 to index
    %c0_13 = arith.constant 0 : index
    %49 = vector.load %arg1[%48, %c0_13] : memref<8x128xi32, #tpu.memory_space<vmem>>, vector<1x128xi32>
    %50 = arith.index_cast %c3_i32 : i32 to index
    %c0_14 = arith.constant 0 : index
    %c0_15 = arith.constant 0 : index
    %51 = vector.load %arg2[%50, %c0_14, %c0_15] : memref<8x128x1xi32, #tpu.memory_space<vmem>>, vector<1x128x1xi32>
    %52 = vector.shape_cast %51 : vector<1x128x1xi32> to vector<128x1xi32>
    %53 = vector.broadcast %52 : vector<128x1xi32> to vector<128x128xi32>
    %54 = vector.broadcast %49 : vector<1x128xi32> to vector<128x128xi32>
    %55 = arith.cmpi eq, %53, %54 : vector<128x128xi32>
    %56 = arith.andi %55, %2 : vector<128x128xi1>
    %57 = arith.extui %56 : vector<128x128xi1> to vector<128x128xi32>
    %58 = arith.sitofp %57 : vector<128x128xi32> to vector<128x128xf32>
    %cst_16 = arith.constant dense<0.000000e+00> : vector<128xf32>
    %59 = vector.multi_reduction <add>, %58, %cst_16 [0] : vector<128x128xf32> to vector<128xf32>
    %60 = vector.shape_cast %59 : vector<128xf32> to vector<1x128xf32>
    %61 = arith.index_cast %c3_i32 : i32 to index
    %c0_17 = arith.constant 0 : index
    %62 = vector.load %arg3[%61, %c0_17] : memref<8x128xf32, #tpu.memory_space<vmem>>, vector<1x128xf32>
    tpu.vector_store %arg3[%61, %c0_17], %60 {strides = array<i32>} : memref<8x128xf32, #tpu.memory_space<vmem>>, vector<1x128xf32>,
    %c4_i32 = arith.constant 4 : i32
    %63 = arith.index_cast %c4_i32 : i32 to index
    %c0_18 = arith.constant 0 : index
    %64 = vector.load %arg1[%63, %c0_18] : memref<8x128xi32, #tpu.memory_space<vmem>>, vector<1x128xi32>
    %65 = arith.index_cast %c4_i32 : i32 to index
    %c0_19 = arith.constant 0 : index
    %c0_20 = arith.constant 0 : index
    %66 = vector.load %arg2[%65, %c0_19, %c0_20] : memref<8x128x1xi32, #tpu.memory_space<vmem>>, vector<1x128x1xi32>
    %67 = vector.shape_cast %66 : vector<1x128x1xi32> to vector<128x1xi32>
    %68 = vector.broadcast %67 : vector<128x1xi32> to vector<128x128xi32>
    %69 = vector.broadcast %64 : vector<1x128xi32> to vector<128x128xi32>
    %70 = arith.cmpi eq, %68, %69 : vector<128x128xi32>
    %71 = arith.andi %70, %2 : vector<128x128xi1>
    %72 = arith.extui %71 : vector<128x128xi1> to vector<128x128xi32>
    %73 = arith.sitofp %72 : vector<128x128xi32> to vector<128x128xf32>
    %cst_21 = arith.constant dense<0.000000e+00> : vector<128xf32>
    %74 = vector.multi_reduction <add>, %73, %cst_21 [0] : vector<128x128xf32> to vector<128xf32>
    %75 = vector.shape_cast %74 : vector<128xf32> to vector<1x128xf32>
    %76 = arith.index_cast %c4_i32 : i32 to index
    %c0_22 = arith.constant 0 : index
    %77 = vector.load %arg3[%76, %c0_22] : memref<8x128xf32, #tpu.memory_space<vmem>>, vector<1x128xf32>
    tpu.vector_store %arg3[%76, %c0_22], %75 {strides = array<i32>} : memref<8x128xf32, #tpu.memory_space<vmem>>, vector<1x128xf32>,
    %c5_i32 = arith.constant 5 : i32
    %78 = arith.index_cast %c5_i32 : i32 to index
    %c0_23 = arith.constant 0 : index
    %79 = vector.load %arg1[%78, %c0_23] : memref<8x128xi32, #tpu.memory_space<vmem>>, vector<1x128xi32>
    %80 = arith.index_cast %c5_i32 : i32 to index
    %c0_24 = arith.constant 0 : index
    %c0_25 = arith.constant 0 : index
    %81 = vector.load %arg2[%80, %c0_24, %c0_25] : memref<8x128x1xi32, #tpu.memory_space<vmem>>, vector<1x128x1xi32>
    %82 = vector.shape_cast %81 : vector<1x128x1xi32> to vector<128x1xi32>
    %83 = vector.broadcast %82 : vector<128x1xi32> to vector<128x128xi32>
    %84 = vector.broadcast %79 : vector<1x128xi32> to vector<128x128xi32>
    %85 = arith.cmpi eq, %83, %84 : vector<128x128xi32>
    %86 = arith.andi %85, %2 : vector<128x128xi1>
    %87 = arith.extui %86 : vector<128x128xi1> to vector<128x128xi32>
    %88 = arith.sitofp %87 : vector<128x128xi32> to vector<128x128xf32>
    %cst_26 = arith.constant dense<0.000000e+00> : vector<128xf32>
    %89 = vector.multi_reduction <add>, %88, %cst_26 [0] : vector<128x128xf32> to vector<128xf32>
    %90 = vector.shape_cast %89 : vector<128xf32> to vector<1x128xf32>
    %91 = arith.index_cast %c5_i32 : i32 to index
    %c0_27 = arith.constant 0 : index
    %92 = vector.load %arg3[%91, %c0_27] : memref<8x128xf32, #tpu.memory_space<vmem>>, vector<1x128xf32>
    tpu.vector_store %arg3[%91, %c0_27], %90 {strides = array<i32>} : memref<8x128xf32, #tpu.memory_space<vmem>>, vector<1x128xf32>,
    %c6_i32 = arith.constant 6 : i32
    %93 = arith.index_cast %c6_i32 : i32 to index
    %c0_28 = arith.constant 0 : index
    %94 = vector.load %arg1[%93, %c0_28] : memref<8x128xi32, #tpu.memory_space<vmem>>, vector<1x128xi32>
    %95 = arith.index_cast %c6_i32 : i32 to index
    %c0_29 = arith.constant 0 : index
    %c0_30 = arith.constant 0 : index
    %96 = vector.load %arg2[%95, %c0_29, %c0_30] : memref<8x128x1xi32, #tpu.memory_space<vmem>>, vector<1x128x1xi32>
    %97 = vector.shape_cast %96 : vector<1x128x1xi32> to vector<128x1xi32>
    %98 = vector.broadcast %97 : vector<128x1xi32> to vector<128x128xi32>
    %99 = vector.broadcast %94 : vector<1x128xi32> to vector<128x128xi32>
    %100 = arith.cmpi eq, %98, %99 : vector<128x128xi32>
    %101 = arith.andi %100, %2 : vector<128x128xi1>
    %102 = arith.extui %101 : vector<128x128xi1> to vector<128x128xi32>
    %103 = arith.sitofp %102 : vector<128x128xi32> to vector<128x128xf32>
    %cst_31 = arith.constant dense<0.000000e+00> : vector<128xf32>
    %104 = vector.multi_reduction <add>, %103, %cst_31 [0] : vector<128x128xf32> to vector<128xf32>
    %105 = vector.shape_cast %104 : vector<128xf32> to vector<1x128xf32>
    %106 = arith.index_cast %c6_i32 : i32 to index
    %c0_32 = arith.constant 0 : index
    %107 = vector.load %arg3[%106, %c0_32] : memref<8x128xf32, #tpu.memory_space<vmem>>, vector<1x128xf32>
    tpu.vector_store %arg3[%106, %c0_32], %105 {strides = array<i32>} : memref<8x128xf32, #tpu.memory_space<vmem>>, vector<1x128xf32>,
    %c7_i32 = arith.constant 7 : i32
    %108 = arith.index_cast %c7_i32 : i32 to index
    %c0_33 = arith.constant 0 : index
    %109 = vector.load %arg1[%108, %c0_33] : memref<8x128xi32, #tpu.memory_space<vmem>>, vector<1x128xi32>
    %110 = arith.index_cast %c7_i32 : i32 to index
    %c0_34 = arith.constant 0 : index
    %c0_35 = arith.constant 0 : index
    %111 = vector.load %arg2[%110, %c0_34, %c0_35] : memref<8x128x1xi32, #tpu.memory_space<vmem>>, vector<1x128x1xi32>
    %112 = vector.shape_cast %111 : vector<1x128x1xi32> to vector<128x1xi32>
    %113 = vector.broadcast %112 : vector<128x1xi32> to vector<128x128xi32>
    %114 = vector.broadcast %109 : vector<1x128xi32> to vector<128x128xi32>
    %115 = arith.cmpi eq, %113, %114 : vector<128x128xi32>
    %116 = arith.andi %115, %2 : vector<128x128xi1>
    %117 = arith.extui %116 : vector<128x128xi1> to vector<128x128xi32>
    %118 = arith.sitofp %117 : vector<128x128xi32> to vector<128x128xf32>
    %cst_36 = arith.constant dense<0.000000e+00> : vector<128xf32>
    %119 = vector.multi_reduction <add>, %118, %cst_36 [0] : vector<128x128xf32> to vector<128xf32>
    %120 = vector.shape_cast %119 : vector<128xf32> to vector<1x128xf32>
    %121 = arith.index_cast %c7_i32 : i32 to index
    %c0_37 = arith.constant 0 : index
    %122 = vector.load %arg3[%121, %c0_37] : memref<8x128xf32, #tpu.memory_space<vmem>>, vector<1x128xf32>
    tpu.vector_store %arg3[%121, %c0_37], %120 {strides = array<i32>} : memref<8x128xf32, #tpu.memory_space<vmem>>, vector<1x128xf32>,
    %c8_i32 = arith.constant 8 : i32
    return
  }
  func.func @transform_0(%arg0: i32) -> (i32, i32) {
    %c0_i32 = arith.constant 0 : i32
    %c0_i32_0 = arith.constant 0 : i32
    return %arg0, %c0_i32 : i32, i32
  }
  func.func @transform_1(%arg0: i32) -> (i32, i32, i32) {
    %c0_i32 = arith.constant 0 : i32
    %c0_i32_0 = arith.constant 0 : i32
    %c0_i32_1 = arith.constant 0 : i32
    return %arg0, %c0_i32, %c0_i32_0 : i32, i32, i32
  }
  func.func @transform_2(%arg0: i32) -> (i32, i32) {
    %c0_i32 = arith.constant 0 : i32
    %c0_i32_0 = arith.constant 0 : i32
    return %arg0, %c0_i32 : i32, i32
  }
}

</mosaic_0001>

<bundles_post_ra>
// kernel: tpu_custom_call.1
= control target key start
LH: loop header
LB: loop body
LE: loop exit
PB: predicated region body
PF: predicated region fallthrough
CT: control target
= control target key end

     0   :  { %v1585_v2 = vmov 0   ;;  %s2657_s0 = inlined_call_operand.vmem [shape: s32[8,128], index: 0, kind: input, shape index: {}]   ;;  %s2658_s1 = inlined_call_operand.vmem [shape: s32[8,128,1], index: 1, kind: input, shape index: {}]   ;;  %s2659_s2 = inlined_call_operand.hbm [shape: f32[8,128], index: 2, kind: output, shape index: {}]  }
   0x1   :  { %v50_v0 = vld [vmem:[%s2658_s1 + $0x10] sm:$0xff]  ;;  %v48_v1 = vld [vmem:[%s2658_s1] sm:$0xff]  ;;  %1560 = vset.pattern.permute.xlu1 %v1585_v2  ;;  %1559 = vset.pattern.permute.xlu0 %v1585_v2  ;;  %v51_v3 = vld [vmem:[%s2658_s1 + $0x18] sm:$0xff] }
   0x2   :  { %71 = vperm.xlu1 %1560, %v50_v0   ;;  %65 = vperm.xlu0 %1559, %v48_v1   ;;  %v49_v4 = vld [vmem:[%s2658_s1 + $0x8] sm:$0xff]  ;;  %v52_v6 = vld [vmem:[%s2658_s1 + $0x20] sm:$0xff]  ;;  %v55_v7 = vld [vmem:[%s2658_s1 + $0x38] sm:$0xff] }
   0x3   :  { %v53_v5 = vld [vmem:[%s2658_s1 + $0x28] sm:$0xff]  ;;  %v54_v8 = vld [vmem:[%s2658_s1 + $0x30] sm:$0xff]  ;;  %v56_v10 = vld [vmem:[%s2658_s1 + $0x40] sm:$0xff] }
   0x4   :  { %v57_v9 = vld [vmem:[%s2658_s1 + $0x48] sm:$0xff]  ;;  %v59_v11 = vld [vmem:[%s2658_s1 + $0x58] sm:$0xff]  ;;  %v58_v12 = vld [vmem:[%s2658_s1 + $0x50] sm:$0xff] }
   0x5   :  { %v61_v13 = vld [vmem:[%s2658_s1 + $0x68] sm:$0xff]  ;;  %v60_v14 = vld [vmem:[%s2658_s1 + $0x60] sm:$0xff] }
   0x6   :  { %74 = vperm.xlu1 %1560, %v51_v3   ;;  %68 = vperm.xlu0 %1559, %v49_v4  }
   0xa   :  { %80 = vperm.xlu1 %1560, %v53_v5   ;;  %77 = vperm.xlu0 %1559, %v52_v6  }
   0xe   :  { %86 = vperm.xlu1 %1560, %v55_v7   ;;  %83 = vperm.xlu0 %1559, %v54_v8  }
  0x12   :  { %92 = vperm.xlu1 %1560, %v57_v9   ;;  %89 = vperm.xlu0 %1559, %v56_v10  }
  0x16   :  { %98 = vperm.xlu1 %1560, %v59_v11   ;;  %95 = vperm.xlu0 %1559, %v58_v12  }
  0x17   :  { %7 = vsyncpa [#allocation3], 0  ;;  %v63_v15 = vld [vmem:[%s2658_s1 + $0x78] sm:$0xff]  ;;  %v62_v16 = vld [vmem:[%s2658_s1 + $0x70] sm:$0xff]  ;;  %v12_v63 = vlaneseq  ;;  %v2702_v11 = vmov 0 }
  0x18   :  { %v1326_v17 = vld [vmem:[%s2658_s1 + $0x88] sm:$0xff]  ;;  %v1325_v18 = vld [vmem:[%s2658_s1 + $0x80] sm:$0xff]  ;;  %v1328_v19 = vld [vmem:[%s2658_s1 + $0x98] sm:$0xff] }
  0x19   :  { %v1327_v20 = vld [vmem:[%s2658_s1 + $0x90] sm:$0xff]  ;;  %v1330_v21 = vld [vmem:[%s2658_s1 + $0xa8] sm:$0xff]  ;;  %v1329_v22 = vld [vmem:[%s2658_s1 + $0xa0] sm:$0xff]  ;;  %v1795_v2 = vshrl.u32 %v12_v63, 7  ;;  %v1797_v3 = vand.u32 127, %v12_v63 }
  0x1a   :  { %104 = vperm.xlu1 %1560, %v61_v13   ;;  %101 = vperm.xlu0 %1559, %v60_v14   ;;  %v1332_v23 = vld [vmem:[%s2658_s1 + $0xb8] sm:$0xff]  ;;  %v1331_v24 = vld [vmem:[%s2658_s1 + $0xb0] sm:$0xff]  ;;  %v1334_v25 = vld [vmem:[%s2658_s1 + $0xc8] sm:$0xff] }
  0x1b   :  { %v1333_v26 = vld [vmem:[%s2658_s1 + $0xc0] sm:$0xff]  ;;  %v1336_v27 = vld [vmem:[%s2658_s1 + $0xd8] sm:$0xff]  ;;  %v1335_v28 = vld [vmem:[%s2658_s1 + $0xd0] sm:$0xff]  ;;  %v15_v6 = vadd.s32 16, %v1795_v2  ;;  %v14_v10 = vadd.s32 8, %v1795_v2  ;;  %vm1814_vm0 = vcmp.le.s32.totalorder %v1795_v2, %v1797_v3  ;;  %v16_v12 = vadd.s32 24, %v1795_v2 }
  0x1c   :  { %v1338_v29 = vld [vmem:[%s2658_s1 + $0xe8] sm:$0xff]  ;;  %v1337_v30 = vld [vmem:[%s2658_s1 + $0xe0] sm:$0xff]  ;;  %v1340_v31 = vld [vmem:[%s2658_s1 + $0xf8] sm:$0xff]  ;;  %v2703_v11 = vsel %vm1814_vm0, 4294967295, %v2702_v11 }
  0x1d   :  { %v1339_v32 = vld [vmem:[%s2658_s1 + $0xf0] sm:$0xff]  ;;  %v1359_v33 = vld [vmem:[%s2658_s1 + $0x108] sm:$0xff]  ;;  %v1358_v34 = vld [vmem:[%s2658_s1 + $0x100] sm:$0xff]  ;;  %vm1827_vm2 = vcmp.le.s32.totalorder %v15_v6, %v1797_v3  ;;  %vm1833_vm4 = vcmp.le.s32.totalorder %v14_v10, %v1797_v3  ;;  %vm1848_vm8 = vcmp.le.s32.totalorder %v16_v12, %v1797_v3  ;;  %v26_v10 = vadd.s32 104, %v1795_v2 }
  0x1e   :  { %110 = vperm.xlu1 %1560, %v63_v15   ;;  %107 = vperm.xlu0 %1559, %v62_v16   ;;  %v1361_v35 = vld [vmem:[%s2658_s1 + $0x118] sm:$0xff]  ;;  %v1360_v36 = vld [vmem:[%s2658_s1 + $0x110] sm:$0xff]  ;;  %v1363_v37 = vld [vmem:[%s2658_s1 + $0x128] sm:$0xff] }
  0x1f   :  { %v1362_v38 = vld [vmem:[%s2658_s1 + $0x120] sm:$0xff]  ;;  %v1365_v39 = vld [vmem:[%s2658_s1 + $0x138] sm:$0xff]  ;;  %v1364_v40 = vld [vmem:[%s2658_s1 + $0x130] sm:$0xff] }
  0x20   :  { %v1367_v41 = vld [vmem:[%s2658_s1 + $0x148] sm:$0xff]  ;;  %v1366_v42 = vld [vmem:[%s2658_s1 + $0x140] sm:$0xff]  ;;  %v1369_v43 = vld [vmem:[%s2658_s1 + $0x158] sm:$0xff] }
  0x21   :  { %v1368_v44 = vld [vmem:[%s2658_s1 + $0x150] sm:$0xff]  ;;  %v1371_v45 = vld [vmem:[%s2658_s1 + $0x168] sm:$0xff]  ;;  %v1370_v46 = vld [vmem:[%s2658_s1 + $0x160] sm:$0xff] }
  0x22   :  { %224 = vperm.xlu1 %1560, %v1326_v17   ;;  %221 = vperm.xlu0 %1559, %v1325_v18   ;;  %v1373_v47 = vld [vmem:[%s2658_s1 + $0x178] sm:$0xff]  ;;  %v1372_v48 = vld [vmem:[%s2658_s1 + $0x170] sm:$0xff]  ;;  %v1392_v49 = vld [vmem:[%s2658_s1 + $0x188] sm:$0xff]  ;;  %v2706_v18 = vmov 0 }
  0x23   :  { %v1391_v50 = vld [vmem:[%s2658_s1 + $0x180] sm:$0xff]  ;;  %v1394_v51 = vld [vmem:[%s2658_s1 + $0x198] sm:$0xff]  ;;  %v1393_v52 = vld [vmem:[%s2658_s1 + $0x190] sm:$0xff]  ;;  %v2707_v18 = vsel %vm1833_vm4, 4294967295, %v2706_v18 }
  0x24   :  { %v1396_v53 = vld [vmem:[%s2658_s1 + $0x1a8] sm:$0xff]  ;;  %v1395_v54 = vld [vmem:[%s2658_s1 + $0x1a0] sm:$0xff]  ;;  %v1398_v55 = vld [vmem:[%s2658_s1 + $0x1b8] sm:$0xff] }
  0x25   :  { %v1397_v56 = vld [vmem:[%s2658_s1 + $0x1b0] sm:$0xff]  ;;  %v1400_v57 = vld [vmem:[%s2658_s1 + $0x1c8] sm:$0xff]  ;;  %v1399_v58 = vld [vmem:[%s2658_s1 + $0x1c0] sm:$0xff] }
  0x26   :  { %230 = vperm.xlu1 %1560, %v1328_v19   ;;  %227 = vperm.xlu0 %1559, %v1327_v20   ;;  %v1402_v59 = vld [vmem:[%s2658_s1 + $0x1d8] sm:$0xff]  ;;  %v1401_v60 = vld [vmem:[%s2658_s1 + $0x1d0] sm:$0xff]  ;;  %v1404_v61 = vld [vmem:[%s2658_s1 + $0x1e8] sm:$0xff]  ;;  %v17_v19 = vadd.s32 32, %v1795_v2  ;;  %v2728_v20 = vmov 0 }
  0x27   :  { %v1403_v62 = vld [vmem:[%s2658_s1 + $0x1e0] sm:$0xff]  ;;  %v1406_v0 = vld [vmem:[%s2658_s1 + $0x1f8] sm:$0xff]  ;;  %v1405_v1 = vld [vmem:[%s2658_s1 + $0x1f0] sm:$0xff] }
  0x28   :  { %v1425_v4 = vld [vmem:[%s2658_s1 + $0x208] sm:$0xff]  ;;  %v1424_v5 = vld [vmem:[%s2658_s1 + $0x200] sm:$0xff]  ;;  %v1427_v13 = vld [vmem:[%s2658_s1 + $0x218] sm:$0xff]  ;;  %vm1865_vm11 = vcmp.le.s32.totalorder %v17_v19, %v1797_v3 }
  0x29   :  { %v1809_v7 = vld [vmem:[%s2657_s0] ss:$0 sm:$0xff]  ;;  %v1426_v14 = vld [vmem:[%s2658_s1 + $0x210] sm:$0xff]  ;;  %v1437_v12 = vld [vmem:[%s2658_s1 + $0x268] sm:$0xff] }
  0x2a   :  { %236 = vperm.xlu1 %1560, %v1330_v21   ;;  %233 = vperm.xlu0 %1559, %v1329_v22   ;;  %v2710_v21 = vmov 0  ;;  %v18_v22 = vadd.s32 40, %v1795_v2 }
  0x2b   :  { %v2711_v21 = vsel %vm1848_vm8, 4294967295, %v2710_v21 }
  0x2c   :  { %vm1877_vm14 = vcmp.le.s32.totalorder %v18_v22, %v1797_v3  ;;  %v27_v22 = vadd.s32 112, %v1795_v2 }
  0x2e   :  { %242 = vperm.xlu1 %1560, %v1332_v23   ;;  %239 = vperm.xlu0 %1559, %v1331_v24   ;;  %v1429_v23 = vld [vmem:[%s2658_s1 + $0x228] sm:$0xff]  ;;  %v1428_v24 = vld [vmem:[%s2658_s1 + $0x220] sm:$0xff] }
  0x32   :  { %248 = vperm.xlu1 %1560, %v1334_v25   ;;  %245 = vperm.xlu0 %1559, %v1333_v26   ;;  %v1586_v25 = vmov 0.0  }
  0x36   :  { %254 = vperm.xlu1 %1560, %v1336_v27   ;;  %251 = vperm.xlu0 %1559, %v1335_v28  }
  0x3a   :  { %260 = vperm.xlu1 %1560, %v1338_v29   ;;  %257 = vperm.xlu0 %1559, %v1337_v30   ;;  %v2712_v30 = vmov 0 }
  0x3b   :  { %v2713_v30 = vsel %vm1865_vm11, 4294967295, %v2712_v30 }
  0x3e   :  { %266 = vperm.xlu1 %1560, %v1340_v31   ;;  %263 = vperm.xlu0 %1559, %v1339_v32   ;;  %v19_v31 = vadd.s32 48, %v1795_v2 }
  0x42   :  { %380 = vperm.xlu1 %1560, %v1359_v33   ;;  %377 = vperm.xlu0 %1559, %v1358_v34   ;;  %v2714_v34 = vmov 0 }
  0x43   :  { %v2715_v34 = vsel %vm1877_vm14, 4294967295, %v2714_v34 }
  0x46   :  { %386 = vperm.xlu1 %1560, %v1361_v35   ;;  %383 = vperm.xlu0 %1559, %v1360_v36   ;;  %v20_v35 = vadd.s32 56, %v1795_v2  ;;  %v1431_v36 = vld [vmem:[%s2658_s1 + $0x238] sm:$0xff] }
  0x4a   :  { %392 = vperm.xlu1 %1560, %v1363_v37   ;;  %389 = vperm.xlu0 %1559, %v1362_v38   ;;  %v1430_v37 = vld [vmem:[%s2658_s1 + $0x230] sm:$0xff] }
  0x4e   :  { %398 = vperm.xlu1 %1560, %v1365_v39   ;;  %395 = vperm.xlu0 %1559, %v1364_v40  }
  0x52   :  { %404 = vperm.xlu1 %1560, %v1367_v41   ;;  %401 = vperm.xlu0 %1559, %v1366_v42   ;;  %v2716_v42 = vmov 0 }
  0x56   :  { %410 = vperm.xlu1 %1560, %v1369_v43   ;;  %407 = vperm.xlu0 %1559, %v1368_v44   ;;  %v21_v43 = vadd.s32 64, %v1795_v2 }
  0x5a   :  { %416 = vperm.xlu1 %1560, %v1371_v45   ;;  %413 = vperm.xlu0 %1559, %v1370_v46   ;;  %v2718_v46 = vmov 0 }
  0x5e   :  { %422 = vperm.xlu1 %1560, %v1373_v47   ;;  %419 = vperm.xlu0 %1559, %v1372_v48   ;;  %v22_v47 = vadd.s32 72, %v1795_v2  ;;  %v1433_v48 = vld [vmem:[%s2658_s1 + $0x248] sm:$0xff] }
  0x62   :  { %536 = vperm.xlu1 %1560, %v1392_v49   ;;  %533 = vperm.xlu0 %1559, %v1391_v50   ;;  %v1432_v49 = vld [vmem:[%s2658_s1 + $0x240] sm:$0xff] }
  0x66   :  { %542 = vperm.xlu1 %1560, %v1394_v51   ;;  %539 = vperm.xlu0 %1559, %v1393_v52  }
  0x6a   :  { %548 = vperm.xlu1 %1560, %v1396_v53   ;;  %545 = vperm.xlu0 %1559, %v1395_v54   ;;  %v2720_v54 = vmov 0 }
  0x6e   :  { %554 = vperm.xlu1 %1560, %v1398_v55   ;;  %551 = vperm.xlu0 %1559, %v1397_v56   ;;  %v23_v55 = vadd.s32 80, %v1795_v2 }
  0x72   :  { %560 = vperm.xlu1 %1560, %v1400_v57   ;;  %557 = vperm.xlu0 %1559, %v1399_v58   ;;  %v2722_v58 = vmov 0 }
  0x76   :  { %566 = vperm.xlu1 %1560, %v1402_v59   ;;  %563 = vperm.xlu0 %1559, %v1401_v60   ;;  %v24_v59 = vadd.s32 88, %v1795_v2  ;;  %v1435_v60 = vld [vmem:[%s2658_s1 + $0x258] sm:$0xff] }
  0x7a   :  { %572 = vperm.xlu1 %1560, %v1404_v61   ;;  %569 = vperm.xlu0 %1559, %v1403_v62   ;;  %v1434_v61 = vld [vmem:[%s2658_s1 + $0x250] sm:$0xff] }
  0x7e   :  { %578 = vperm.xlu1 %1560, %v1406_v0   ;;  %575 = vperm.xlu0 %1559, %v1405_v1  }
  0x81   :  { %v72_v8 = vpop.permute.xlu1 %71  ;;  %v66_v9 = vpop.permute.xlu0 %65 }
  0x82   :  { %692 = vperm.xlu1 %1560, %v1425_v4   ;;  %689 = vperm.xlu0 %1559, %v1424_v5   ;;  %vm116_vm1 = vcmp.eq.s32.totalorder %v66_v9, %v1809_v7  ;;  %vm118_vm3 = vcmp.eq.s32.totalorder %v72_v8, %v1809_v7  ;;  %v2724_v4 = vmov 0  ;;  %v25_v5 = vadd.s32 96, %v1795_v2 }
  0x83   :  { %vm132_vm5 = vmand %vm116_vm1, %vm1814_vm0  ;;  %v2726_v9 = vmov 0 }
  0x84   :  { %vm1843_vm7 = vmand %vm118_vm3, %vm1827_vm2  ;;  %v1309_v26 = vsel %vm132_vm5, 1.0, %v1586_v25  ;;  %vm1893_vm3 = vcmp.le.s32.totalorder %v19_v31, %v1797_v3 }
  0x85   :  { %v75_v16 = vpop.permute.xlu1 %74  ;;  %v69_v17 = vpop.permute.xlu0 %68  ;;  %v1311_v33 = vsel %vm1843_vm7, 1.0, %v1586_v25  ;;  %v2717_v42 = vsel %vm1893_vm3, 4294967295, %v2716_v42  ;;  %vm1903_vm7 = vcmp.le.s32.totalorder %v20_v35, %v1797_v3 }
  0x86   :  { %vm117_vm6 = vcmp.eq.s32.totalorder %v69_v17, %v1809_v7  ;;  %698 = vperm.xlu1 %1560, %v1427_v13   ;;  %695 = vperm.xlu0 %1559, %v1426_v14   ;;  %vm119_vm9 = vcmp.eq.s32.totalorder %v75_v16, %v1809_v7  ;;  %v2719_v46 = vsel %vm1903_vm7, 4294967295, %v2718_v46  ;;  %v1436_v13 = vld [vmem:[%s2658_s1 + $0x260] sm:$0xff] }
  0x87   :  { %vm133_vm10 = vmand %vm117_vm6, %vm1833_vm4 }
  0x88   :  { %v1310_v27 = vsel %vm133_vm10, 1.0, %v1586_v25  ;;  %vm135_vm12 = vmand %vm119_vm9, %vm1848_vm8 }
  0x89   :  { %v81_v28 = vpop.permute.xlu1 %80  ;;  %v78_v29 = vpop.permute.xlu0 %77  ;;  %v180_v32 = vadd.f32 %v1310_v27, %v1309_v26  ;;  %v1312_v39 = vsel %vm135_vm12, 1.0, %v1586_v25  ;;  %vm1919_vm12 = vcmp.le.s32.totalorder %v21_v43, %v1797_v3  ;;  %v2730_v26 = vmov 0 }
  0x8a   :  { %vm120_vm13 = vcmp.eq.s32.totalorder %v78_v29, %v1809_v7  ;;  %704 = vperm.xlu1 %1560, %v1429_v23   ;;  %701 = vperm.xlu0 %1559, %v1428_v24   ;;  %vm121_vm15 = vcmp.eq.s32.totalorder %v81_v28, %v1809_v7  ;;  %v2721_v54 = vsel %vm1919_vm12, 4294967295, %v2720_v54  ;;  %v28_v27 = vadd.s32 120, %v1795_v2  ;;  %v1439_v28 = vld [vmem:[%s2658_s1 + $0x278] sm:$0xff]  ;;  %v1438_v29 = vld [vmem:[%s2658_s1 + $0x270] sm:$0xff] }
  0x8b   :  { %v181_v38 = vadd.f32 %v1311_v33, %v180_v32  ;;  %vm136_vm1 = vmand %vm120_vm13, %vm1865_vm11 }
  0x8c   :  { %vm137_vm5 = vmand %vm121_vm15, %vm1877_vm14  ;;  %v1313_v45 = vsel %vm136_vm1, 1.0, %v1586_v25  ;;  %vm1929_vm1 = vcmp.le.s32.totalorder %v22_v47, %v1797_v3 }
  0x8d   :  { %v87_v40 = vpop.permute.xlu1 %86  ;;  %v84_v41 = vpop.permute.xlu0 %83  ;;  %v182_v44 = vadd.f32 %v1312_v39, %v181_v38  ;;  %v1314_v51 = vsel %vm137_vm5, 1.0, %v1586_v25  ;;  %v2723_v58 = vsel %vm1929_vm1, 4294967295, %v2722_v58  ;;  %v2734_v38 = vmov 0  ;;  %v2014_v39 = vld [vmem:[%s2657_s0 + $0x1] ss:$0 sm:$0xff] }
  0x8e   :  { %vm122_vm6 = vcmp.eq.s32.totalorder %v84_v41, %v1809_v7  ;;  %710 = vperm.xlu1 %1560, %v1431_v36   ;;  %707 = vperm.xlu0 %1559, %v1430_v37   ;;  %vm123_vm9 = vcmp.eq.s32.totalorder %v87_v40, %v1809_v7  ;;  %v2732_v36 = vmov 0  ;;  %v1458_v40 = vld [vmem:[%s2658_s1 + $0x288] sm:$0xff]  ;;  %v1457_v41 = vld [vmem:[%s2658_s1 + $0x280] sm:$0xff] }
  0x8f   :  { %v183_v50 = vadd.f32 %v1313_v45, %v182_v44  ;;  %vm138_vm10 = vmand %vm122_vm6, %vm1893_vm3 }
  0x90   :  { %vm139_vm13 = vmand %vm123_vm9, %vm1903_vm7  ;;  %v1315_v57 = vsel %vm138_vm10, 1.0, %v1586_v25  ;;  %vm1945_vm9 = vcmp.le.s32.totalorder %v23_v55, %v1797_v3 }
  0x91   :  { %v93_v52 = vpop.permute.xlu1 %92  ;;  %v90_v53 = vpop.permute.xlu0 %89  ;;  %v184_v56 = vadd.f32 %v1314_v51, %v183_v50  ;;  %v1316_v63 = vsel %vm139_vm13, 1.0, %v1586_v25  ;;  %v2725_v4 = vsel %vm1945_vm9, 4294967295, %v2724_v4  ;;  %vm1955_vm13 = vcmp.le.s32.totalorder %v24_v59, %v1797_v3  ;;  %v1459_v50 = vld [vmem:[%s2658_s1 + $0x290] sm:$0xff]  ;;  %v1462_v59 = vld [vmem:[%s2658_s1 + $0x2a8] sm:$0xff] }
  0x92   :  { %vm124_vm15 = vcmp.eq.s32.totalorder %v90_v53, %v1809_v7  ;;  %716 = vperm.xlu1 %1560, %v1433_v48   ;;  %713 = vperm.xlu0 %1559, %v1432_v49   ;;  %vm125_vm5 = vcmp.eq.s32.totalorder %v93_v52, %v1809_v7  ;;  %v2727_v9 = vsel %vm1955_vm13, 4294967295, %v2726_v9  ;;  %v1460_v48 = vld [vmem:[%s2658_s1 + $0x298] sm:$0xff] }
  0x93   :  { %v185_v62 = vadd.f32 %v1315_v57, %v184_v56  ;;  %vm140_vm6 = vmand %vm124_vm15, %vm1919_vm12 }
  0x94   :  { %vm141_vm10 = vmand %vm125_vm5, %vm1929_vm1  ;;  %v1317_v8 = vsel %vm140_vm6, 1.0, %v1586_v25  ;;  %vm1971_vm6 = vcmp.le.s32.totalorder %v25_v5, %v1797_v3 }
  0x95   :  { %v99_v0 = vpop.permute.xlu1 %98  ;;  %v96_v1 = vpop.permute.xlu0 %95  ;;  %v186_v6 = vadd.f32 %v1316_v63, %v185_v62  ;;  %v1318_v16 = vsel %vm141_vm10, 1.0, %v1586_v25  ;;  %v2729_v20 = vsel %vm1971_vm6, 4294967295, %v2728_v20  ;;  %v1461_v62 = vld [vmem:[%s2658_s1 + $0x2a0] sm:$0xff] }
  0x96   :  { %vm126_vm3 = vcmp.eq.s32.totalorder %v96_v1, %v1809_v7  ;;  %722 = vperm.xlu1 %1560, %v1435_v60   ;;  %719 = vperm.xlu0 %1559, %v1434_v61   ;;  %vm127_vm15 = vcmp.eq.s32.totalorder %v99_v0, %v1809_v7 }
  0x97   :  { %v187_v14 = vadd.f32 %v1317_v8, %v186_v6  ;;  %vm142_vm5 = vmand %vm126_vm3, %vm1945_vm9  ;;  %vm1981_vm3 = vcmp.le.s32.totalorder %v26_v10, %v1797_v3  ;;  %v1464_v10 = vld [vmem:[%s2658_s1 + $0x2b8] sm:$0xff] }
  0x98   :  { %vm143_vm12 = vmand %vm127_vm15, %vm1955_vm13  ;;  %v1319_v24 = vsel %vm142_vm5, 1.0, %v1586_v25  ;;  %v2731_v26 = vsel %vm1981_vm3, 4294967295, %v2730_v26  ;;  %vm1997_vm5 = vcmp.le.s32.totalorder %v27_v22, %v1797_v3 }
  0x99   :  { %v105_v17 = vpop.permute.xlu1 %104  ;;  %v102_v19 = vpop.permute.xlu0 %101  ;;  %v188_v23 = vadd.f32 %v1318_v16, %v187_v14  ;;  %v1320_v32 = vsel %vm143_vm12, 1.0, %v1586_v25  ;;  %v2733_v36 = vsel %vm1997_vm5, 4294967295, %v2732_v36  ;;  %v1463_v14 = vld [vmem:[%s2658_s1 + $0x2b0] sm:$0xff] }
  0x9a   :  { %vm128_vm1 = vcmp.eq.s32.totalorder %v102_v19, %v1809_v7  ;;  %728 = vperm.xlu1 %1560, %v1437_v12   ;;  %725 = vperm.xlu0 %1559, %v1436_v13   ;;  %vm129_vm10 = vcmp.eq.s32.totalorder %v105_v17, %v1809_v7 }
  0x9b   :  { %v189_v31 = vadd.f32 %v1319_v24, %v188_v23  ;;  %vm144_vm15 = vmand %vm128_vm1, %vm1971_vm6  ;;  %vm2006_vm1 = vcmp.le.s32.totalorder %v28_v27, %v1797_v3  ;;  %v1466_v27 = vld [vmem:[%s2658_s1 + $0x2c8] sm:$0xff] }
  0x9c   :  { %vm145_vm9 = vmand %vm129_vm10, %vm1981_vm3  ;;  %v1321_v37 = vsel %vm144_vm15, 1.0, %v1586_v25  ;;  %v2735_v38 = vsel %vm2006_vm1, 4294967295, %v2734_v38 }
  0x9d   :  { %v111_v33 = vpop.permute.xlu1 %110  ;;  %v108_v35 = vpop.permute.xlu0 %107  ;;  %v190_v2 = vadd.f32 %v1320_v32, %v189_v31  ;;  %v1322_v3 = vsel %vm145_vm9, 1.0, %v1586_v25  ;;  %v1465_v31 = vld [vmem:[%s2658_s1 + $0x2c0] sm:$0xff] }
  0x9e   :  { %vm130_vm13 = vcmp.eq.s32.totalorder %v108_v35, %v1809_v7  ;;  %734 = vperm.xlu1 %1560, %v1439_v28   ;;  %731 = vperm.xlu0 %1559, %v1438_v29   ;;  %vm131_vm12 = vcmp.eq.s32.totalorder %v111_v33, %v1809_v7 }
  0x9f   :  { %v191_v43 = vadd.f32 %v1321_v37, %v190_v2  ;;  %vm146_vm10 = vmand %vm130_vm13, %vm1997_vm5 }
  0xa0   :  { %vm147_vm15 = vmand %vm131_vm12, %vm2006_vm1  ;;  %v1323_v47 = vsel %vm146_vm10, 1.0, %v1586_v25 }
  0xa1   :  { %v225_v7 = vpop.permute.xlu1 %224  ;;  %v222_v44 = vpop.permute.xlu0 %221  ;;  %v192_v45 = vadd.f32 %v1322_v3, %v191_v43  ;;  %v1324_v51 = vsel %vm147_vm15, 1.0, %v1586_v25  ;;  %v1467_v3 = vld [vmem:[%s2658_s1 + $0x2d0] sm:$0xff] }
  0xa2   :  { %vm273_vm6 = vcmp.eq.s32.totalorder %v225_v7, %v2014_v39  ;;  %vm272_vm3 = vcmp.eq.s32.totalorder %v222_v44, %v2014_v39  ;;  %848 = vperm.xlu1 %1560, %v1458_v40   ;;  %845 = vperm.xlu0 %1559, %v1457_v41   ;;  %v1468_v41 = vld [vmem:[%s2658_s1 + $0x2d8] sm:$0xff] }
  0xa3   :  { %vm289_vm7 = vmand %vm273_vm6, %vm1833_vm4  ;;  %v193_v49 = vadd.f32 %v1323_v47, %v192_v45 }
  0xa4   :  { %vm288_vm9 = vmand %vm272_vm3, %vm1814_vm0  ;;  %v1343_v52 = vsel %vm289_vm7, 1.0, %v1586_v25 }
  0xa5   :  { %v1342_v53 = vsel %vm288_vm9, 1.0, %v1586_v25  ;;  %v231_v55 = vpop.permute.xlu1 %230  ;;  %v228_v56 = vpop.permute.xlu0 %227  ;;  %v194_v57 = vadd.f32 %v1324_v51, %v193_v49  ;;  %v1470_v49 = vld [vmem:[%s2658_s1 + $0x2e8] sm:$0xff]  ;;  %v1469_v51 = vld [vmem:[%s2658_s1 + $0x2e0] sm:$0xff] }
  0xa6   :  { %vm275_vm13 = vcmp.eq.s32.totalorder %v231_v55, %v2014_v39  ;;  %vm274_vm6 = vcmp.eq.s32.totalorder %v228_v56, %v2014_v39  ;;  %854 = vperm.xlu1 %1560, %v1460_v48   ;;  %851 = vperm.xlu0 %1559, %v1459_v50   ;;  %v336_v61 = vadd.f32 %v1343_v52, %v1342_v53 }
  0xa7   :  { %vm291_vm3 = vmand %vm275_vm13, %vm1848_vm8  ;;  %v195_v60 = vrot.slane %v194_v57, 4 }
  0xa8   :  { %vm290_vm7 = vmand %vm274_vm6, %vm1827_vm2  ;;  %v1345_v8 = vsel %vm291_vm3, 1.0, %v1586_v25  ;;  %vm2736_vm3 = vnez %v2719_v46 }
  0xa9   :  { %v1344_v63 = vsel %vm290_vm7, 1.0, %v1586_v25  ;;  %v237_v0 = vpop.permute.xlu1 %236  ;;  %v234_v1 = vpop.permute.xlu0 %233  ;;  %v196_v5 = vadd.f32 %v195_v60, %v194_v57 }
  0xaa   :  { %v337_v6 = vadd.f32 %v1344_v63, %v336_v61  ;;  %vm277_vm12 = vcmp.eq.s32.totalorder %v237_v0, %v2014_v39  ;;  %vm276_vm10 = vcmp.eq.s32.totalorder %v234_v1, %v2014_v39  ;;  %860 = vperm.xlu1 %1560, %v1462_v59   ;;  %857 = vperm.xlu0 %1559, %v1461_v62   ;;  %v1472_v59 = vld [vmem:[%s2658_s1 + $0x2f8] sm:$0xff]  ;;  %v1471_v61 = vld [vmem:[%s2658_s1 + $0x2f0] sm:$0xff] }
  0xab   :  { %vm293_vm15 = vmand %vm277_vm12, %vm1877_vm14  ;;  %v197_v12 = vrot.slane %v196_v5, 2  ;;  %vm2737_vm12 = vnez %v2717_v42 }
  0xac   :  { %vm292_vm9 = vmand %vm276_vm10, %vm1865_vm11  ;;  %v338_v13 = vadd.f32 %v1345_v8, %v337_v6  ;;  %v1347_v24 = vsel %vm293_vm15, 1.0, %v1586_v25  ;;  %v2134_v6 = vld [vmem:[%s2657_s0 + $0x2] ss:$0 sm:$0xff]  ;;  %v1491_v8 = vld [vmem:[%s2658_s1 + $0x308] sm:$0xff] }
  0xad   :  { %v1346_v16 = vsel %vm292_vm9, 1.0, %v1586_v25  ;;  %v243_v17 = vpop.permute.xlu1 %242  ;;  %v240_v19 = vpop.permute.xlu0 %239  ;;  %v198_v22 = vadd.f32 %v197_v12, %v196_v5 }
  0xae   :  { %v339_v23 = vadd.f32 %v1346_v16, %v338_v13  ;;  %vm279_vm13 = vcmp.eq.s32.totalorder %v243_v17, %v2014_v39  ;;  %vm278_vm6 = vcmp.eq.s32.totalorder %v240_v19, %v2014_v39  ;;  %866 = vperm.xlu1 %1560, %v1464_v10   ;;  %863 = vperm.xlu0 %1559, %v1463_v14   ;;  %v1490_v10 = vld [vmem:[%s2658_s1 + $0x300] sm:$0xff]  ;;  %v1493_v19 = vld [vmem:[%s2658_s1 + $0x318] sm:$0xff] }
  0xaf   :  { %vm295_vm7 = vmand %vm279_vm13, %vm2736_vm3  ;;  %v199_v28 = vrot.slane %v198_v22, 1  ;;  %vm2738_vm13 = vnez %v2723_v58 }
  0xb0   :  { %vm294_vm10 = vmand %vm278_vm6, %vm2737_vm12  ;;  %v340_v29 = vadd.f32 %v1347_v24, %v339_v23  ;;  %v1349_v40 = vsel %vm295_vm7, 1.0, %v1586_v25  ;;  %v1492_v23 = vld [vmem:[%s2658_s1 + $0x310] sm:$0xff] }
  0xb1   :  { %v1348_v32 = vsel %vm294_vm10, 1.0, %v1586_v25  ;;  %v249_v33 = vpop.permute.xlu1 %248  ;;  %v246_v35 = vpop.permute.xlu0 %245  ;;  %v200_v2 = vadd.f32 %v199_v28, %v198_v22  ;;  %vm2739_vm10 = vnez %v2721_v54 }
  0xb2   :  { %v341_v37 = vadd.f32 %v1348_v32, %v340_v29  ;;  %vm281_vm15 = vcmp.eq.s32.totalorder %v249_v33, %v2014_v39  ;;  %vm280_vm9 = vcmp.eq.s32.totalorder %v246_v35, %v2014_v39  ;;  %872 = vperm.xlu1 %1560, %v1466_v27   ;;  %869 = vperm.xlu0 %1559, %v1465_v31   ;;  %v1523_v32 = vld [vmem:[%s2658_s1 + $0x380] sm:$0xff] }
  0xb3   :  { %vm297_vm6 = vmand %vm281_vm15, %vm2738_vm13  ;;  %201 = vst [vmem:[#allocation2] sm:$0x1] %v200_v2  ;;  %vm2740_vm13 = vnez %v2727_v9  ;;  %v1494_v2 = vld [vmem:[%s2658_s1 + $0x320] sm:$0xff] }
  0xb4   :  { %vm296_vm12 = vmand %vm280_vm9, %vm2739_vm10  ;;  %v342_v43 = vadd.f32 %v1349_v40, %v341_v37  ;;  %v1351_v48 = vsel %vm297_vm6, 1.0, %v1586_v25 }
  0xb5   :  { %v1350_v7 = vsel %vm296_vm12, 1.0, %v1586_v25  ;;  %v255_v44 = vpop.permute.xlu1 %254  ;;  %v252_v45 = vpop.permute.xlu0 %251  ;;  %vm2741_vm12 = vnez %v2725_v4 }
  0xb6   :  { %v343_v47 = vadd.f32 %v1350_v7, %v342_v43  ;;  %vm283_vm7 = vcmp.eq.s32.totalorder %v255_v44, %v2014_v39  ;;  %vm282_vm15 = vcmp.eq.s32.totalorder %v252_v45, %v2014_v39  ;;  %878 = vperm.xlu1 %1560, %v1468_v41   ;;  %875 = vperm.xlu0 %1559, %v1467_v3   ;;  %v1525_v44 = vld [vmem:[%s2658_s1 + $0x390] sm:$0xff] }
  0xb7   :  { %vm299_vm9 = vmand %vm283_vm7, %vm2740_vm13  ;;  %vm2742_vm13 = vnez %v2731_v26 }
  0xb8   :  { %vm298_vm10 = vmand %vm282_vm15, %vm2741_vm12  ;;  %v344_v50 = vadd.f32 %v1351_v48, %v343_v47  ;;  %v1353_v57 = vsel %vm299_vm9, 1.0, %v1586_v25  ;;  %v1524_v48 = vld [vmem:[%s2658_s1 + $0x388] sm:$0xff] }
  0xb9   :  { %v1352_v52 = vsel %vm298_vm10, 1.0, %v1586_v25  ;;  %v261_v53 = vpop.permute.xlu1 %260  ;;  %v258_v55 = vpop.permute.xlu0 %257  ;;  %vm2743_vm10 = vnez %v2729_v20 }
  0xba   :  { %v345_v56 = vadd.f32 %v1352_v52, %v344_v50  ;;  %vm285_vm6 = vcmp.eq.s32.totalorder %v261_v53, %v2014_v39  ;;  %vm284_vm7 = vcmp.eq.s32.totalorder %v258_v55, %v2014_v39  ;;  %884 = vperm.xlu1 %1560, %v1470_v49   ;;  %881 = vperm.xlu0 %1559, %v1469_v51  }
  0xbb   :  { %vm301_vm15 = vmand %vm285_vm6, %vm2742_vm13 }
  0xbc   :  { %vm300_vm12 = vmand %vm284_vm7, %vm2743_vm10  ;;  %v346_v60 = vadd.f32 %v1353_v57, %v345_v56  ;;  %v1355_v5 = vsel %vm301_vm15, 1.0, %v1586_v25  ;;  %v1527_v56 = vld [vmem:[%s2658_s1 + $0x3a0] sm:$0xff] }
  0xbd   :  { %v1354_v62 = vsel %vm300_vm12, 1.0, %v1586_v25  ;;  %v267_v63 = vpop.permute.xlu1 %266  ;;  %v264_v0 = vpop.permute.xlu0 %263 }
  0xbe   :  { %v347_v1 = vadd.f32 %v1354_v62, %v346_v60  ;;  %vm287_vm9 = vcmp.eq.s32.totalorder %v267_v63, %v2014_v39  ;;  %vm286_vm6 = vcmp.eq.s32.totalorder %v264_v0, %v2014_v39  ;;  %890 = vperm.xlu1 %1560, %v1472_v59   ;;  %887 = vperm.xlu0 %1559, %v1471_v61   ;;  %v1526_v60 = vld [vmem:[%s2658_s1 + $0x398] sm:$0xff] }
  0xbf   :  { %vm303_vm7 = vmand %vm287_vm9, %vm2006_vm1 }
  0xc0   :  { %vm302_vm12 = vmand %vm286_vm6, %vm1997_vm5  ;;  %v348_v39 = vadd.f32 %v1355_v5, %v347_v1  ;;  %v1357_v17 = vsel %vm303_vm7, 1.0, %v1586_v25  ;;  %v1528_v5 = vld [vmem:[%s2658_s1 + $0x3a8] sm:$0xff] }
  0xc1   :  { %v1356_v12 = vsel %vm302_vm12, 1.0, %v1586_v25  ;;  %v381_v13 = vpop.permute.xlu1 %380  ;;  %v378_v14 = vpop.permute.xlu0 %377 }
  0xc2   :  { %v349_v16 = vadd.f32 %v1356_v12, %v348_v39  ;;  %vm429_vm15 = vcmp.eq.s32.totalorder %v381_v13, %v2134_v6  ;;  %vm428_vm9 = vcmp.eq.s32.totalorder %v378_v14, %v2134_v6  ;;  %1004 = vperm.xlu1 %1560, %v1491_v8   ;;  %1001 = vperm.xlu0 %1559, %v1490_v10   ;;  %v1495_v39 = vld [vmem:[%s2658_s1 + $0x328] sm:$0xff] }
  0xc3   :  { %vm445_vm6 = vmand %vm429_vm15, %vm1833_vm4 }
  0xc4   :  { %v350_v22 = vadd.f32 %v1357_v17, %v349_v16  ;;  %vm444_vm12 = vmand %vm428_vm9, %vm1814_vm0  ;;  %v1376_v24 = vsel %vm445_vm6, 1.0, %v1586_v25  ;;  %v1529_v17 = vld [vmem:[%s2658_s1 + $0x3b0] sm:$0xff] }
  0xc5   :  { %v1375_v27 = vsel %vm444_vm12, 1.0, %v1586_v25  ;;  %v387_v28 = vpop.permute.xlu1 %386  ;;  %v384_v29 = vpop.permute.xlu0 %383 }
  0xc6   :  { %v351_v31 = vrot.slane %v350_v22, 4  ;;  %vm431_vm7 = vcmp.eq.s32.totalorder %v387_v28, %v2134_v6  ;;  %vm430_vm15 = vcmp.eq.s32.totalorder %v384_v29, %v2134_v6  ;;  %1010 = vperm.xlu1 %1560, %v1493_v19   ;;  %1007 = vperm.xlu0 %1559, %v1492_v23   ;;  %v492_v35 = vadd.f32 %v1376_v24, %v1375_v27 }
  0xc7   :  { %vm447_vm4 = vmand %vm431_vm7, %vm1848_vm8 }
  0xc8   :  { %v352_v33 = vadd.f32 %v351_v31, %v350_v22  ;;  %vm446_vm9 = vmand %vm430_vm15, %vm1827_vm2  ;;  %v1378_v7 = vsel %vm447_vm4, 1.0, %v1586_v25  ;;  %v1496_v22 = vld [vmem:[%s2658_s1 + $0x330] sm:$0xff]  ;;  %v1530_v31 = vld [vmem:[%s2658_s1 + $0x3b8] sm:$0xff] }
  0xc9   :  { %v1377_v37 = vsel %vm446_vm9, 1.0, %v1586_v25  ;;  %v393_v40 = vpop.permute.xlu1 %392  ;;  %v390_v41 = vpop.permute.xlu0 %389 }
  0xca   :  { %v353_v43 = vrot.slane %v352_v33, 2  ;;  %v493_v3 = vadd.f32 %v1377_v37, %v492_v35  ;;  %vm433_vm6 = vcmp.eq.s32.totalorder %v393_v40, %v2134_v6  ;;  %vm432_vm12 = vcmp.eq.s32.totalorder %v390_v41, %v2134_v6  ;;  %1157 = vperm.xlu1 %1560, %v1523_v32   ;;  %1013 = vperm.xlu0 %1559, %v1494_v2  }
  0xcb   :  { %vm449_vm7 = vmand %vm433_vm6, %vm1877_vm14 }
  0xcc   :  { %v354_v45 = vadd.f32 %v353_v43, %v352_v33  ;;  %vm448_vm15 = vmand %vm432_vm12, %vm1865_vm11  ;;  %v494_v47 = vadd.f32 %v1378_v7, %v493_v3  ;;  %v1380_v55 = vsel %vm449_vm7, 1.0, %v1586_v25  ;;  %vm2744_vm12 = vnez %v2717_v42  ;;  %v1497_v33 = vld [vmem:[%s2658_s1 + $0x338] sm:$0xff]  ;;  %v2251_v43 = vld [vmem:[%s2657_s0 + $0x3] ss:$0 sm:$0xff] }
  0xcd   :  { %v1379_v49 = vsel %vm448_vm15, 1.0, %v1586_v25  ;;  %v399_v50 = vpop.permute.xlu1 %398  ;;  %v396_v51 = vpop.permute.xlu0 %395  ;;  %v1531_v3 = vld [vmem:[%s2658_s1 + $0x3c0] sm:$0xff] }
  0xce   :  { %v355_v52 = vrot.slane %v354_v45, 1  ;;  %v495_v53 = vadd.f32 %v1379_v49, %v494_v47  ;;  %vm435_vm4 = vcmp.eq.s32.totalorder %v399_v50, %v2134_v6  ;;  %vm434_vm9 = vcmp.eq.s32.totalorder %v396_v51, %v2134_v6  ;;  %1163 = vperm.xlu1 %1560, %v1525_v44   ;;  %1160 = vperm.xlu0 %1559, %v1524_v48   ;;  %v1498_v7 = vld [vmem:[%s2658_s1 + $0x340] sm:$0xff]  ;;  %v1532_v50 = vld [vmem:[%s2658_s1 + $0x3c8] sm:$0xff] }
  0xcf   :  { %vm451_vm6 = vmand %vm435_vm4, %vm2736_vm3 }
  0xd0   :  { %v356_v57 = vadd.f32 %v355_v52, %v354_v45  ;;  %vm450_vm15 = vmand %vm434_vm9, %vm2744_vm12  ;;  %v496_v59 = vadd.f32 %v1380_v55, %v495_v53  ;;  %v1382_v1 = vsel %vm451_vm6, 1.0, %v1586_v25  ;;  %vm2745_vm9 = vnez %v2723_v58  ;;  %v1499_v52 = vld [vmem:[%s2658_s1 + $0x348] sm:$0xff] }
  0xd1   :  { %v1381_v61 = vsel %vm450_vm15, 1.0, %v1586_v25  ;;  %v405_v62 = vpop.permute.xlu1 %404  ;;  %v402_v63 = vpop.permute.xlu0 %401  ;;  %vm2746_vm15 = vnez %v2721_v54 }
  0xd2   :  { %357 = vst [vmem:[#allocation2 + $0x1] sm:$0x1] %v356_v57  ;;  %v497_v0 = vadd.f32 %v1381_v61, %v496_v59  ;;  %vm437_vm7 = vcmp.eq.s32.totalorder %v405_v62, %v2134_v6  ;;  %vm436_vm4 = vcmp.eq.s32.totalorder %v402_v63, %v2134_v6  ;;  %1169 = vperm.xlu1 %1560, %v1527_v56   ;;  %v1500_v63 = vld [vmem:[%s2658_s1 + $0x350] sm:$0xff] }
  0xd3   :  { %vm453_vm12 = vmand %vm437_vm7, %vm2745_vm9  ;;  %1166 = vperm.xlu0 %1559, %v1526_v60   ;;  %vm2747_vm9 = vnez %v2727_v9  ;;  %v1533_v60 = vld [vmem:[%s2658_s1 + $0x3d0] sm:$0xff] }
  0xd4   :  { %vm452_vm3 = vmand %vm436_vm4, %vm2746_vm15  ;;  %v498_v8 = vadd.f32 %v1382_v1, %v497_v0  ;;  %v1384_v16 = vsel %vm453_vm12, 1.0, %v1586_v25 }
  0xd5   :  { %v1383_v10 = vsel %vm452_vm3, 1.0, %v1586_v25  ;;  %v411_v12 = vpop.permute.xlu1 %410  ;;  %v408_v13 = vpop.permute.xlu0 %407  ;;  %vm2748_vm3 = vnez %v2725_v4 }
  0xd6   :  { %v499_v14 = vadd.f32 %v1383_v10, %v498_v8  ;;  %vm439_vm6 = vcmp.eq.s32.totalorder %v411_v12, %v2134_v6  ;;  %vm438_vm7 = vcmp.eq.s32.totalorder %v408_v13, %v2134_v6  ;;  %1172 = vperm.xlu1 %1560, %v1528_v5   ;;  %v1534_v12 = vld [vmem:[%s2658_s1 + $0x3d8] sm:$0xff] }
  0xd7   :  { %vm455_vm4 = vmand %vm439_vm6, %vm2747_vm9  ;;  %1016 = vperm.xlu0 %1559, %v1495_v39  }
  0xd8   :  { %vm454_vm15 = vmand %vm438_vm7, %vm2748_vm3  ;;  %v500_v19 = vadd.f32 %v1384_v16, %v499_v14  ;;  %v1386_v29 = vsel %vm455_vm4, 1.0, %v1586_v25  ;;  %v1501_v16 = vld [vmem:[%s2658_s1 + $0x358] sm:$0xff] }
  0xd9   :  { %v1385_v23 = vsel %vm454_vm15, 1.0, %v1586_v25  ;;  %v417_v24 = vpop.permute.xlu1 %416  ;;  %v414_v27 = vpop.permute.xlu0 %413 }
  0xda   :  { %v501_v28 = vadd.f32 %v1385_v23, %v500_v19  ;;  %vm441_vm12 = vcmp.eq.s32.totalorder %v417_v24, %v2134_v6  ;;  %vm440_vm6 = vcmp.eq.s32.totalorder %v414_v27, %v2134_v6  ;;  %1175 = vperm.xlu1 %1560, %v1529_v17  }
  0xdb   :  { %vm457_vm7 = vmand %vm441_vm12, %vm2742_vm13  ;;  %1019 = vperm.xlu0 %1559, %v1496_v22  }
  0xdc   :  { %vm456_vm15 = vmand %vm440_vm6, %vm2743_vm10  ;;  %v502_v32 = vadd.f32 %v1386_v29, %v501_v28  ;;  %v1388_v41 = vsel %vm457_vm7, 1.0, %v1586_v25  ;;  %v1535_v28 = vld [vmem:[%s2658_s1 + $0x3e0] sm:$0xff] }
  0xdd   :  { %v1387_v35 = vsel %vm456_vm15, 1.0, %v1586_v25  ;;  %v423_v2 = vpop.permute.xlu1 %422  ;;  %v420_v37 = vpop.permute.xlu0 %419 }
  0xde   :  { %v503_v40 = vadd.f32 %v1387_v35, %v502_v32  ;;  %vm443_vm4 = vcmp.eq.s32.totalorder %v423_v2, %v2134_v6  ;;  %vm442_vm12 = vcmp.eq.s32.totalorder %v420_v37, %v2134_v6  ;;  %1178 = vperm.xlu1 %1560, %v1530_v31   ;;  %v1502_v32 = vld [vmem:[%s2658_s1 + $0x360] sm:$0xff] }
  0xdf   :  { %vm459_vm6 = vmand %vm443_vm4, %vm2006_vm1  ;;  %1022 = vperm.xlu0 %1559, %v1497_v33   ;;  %vm2749_vm1 = vnez %v2707_v18 }
  0xe0   :  { %vm458_vm15 = vmand %vm442_vm12, %vm1997_vm5  ;;  %v504_v6 = vadd.f32 %v1388_v41, %v503_v40  ;;  %v1390_v49 = vsel %vm459_vm6, 1.0, %v1586_v25  ;;  %v1536_v41 = vld [vmem:[%s2658_s1 + $0x3e8] sm:$0xff] }
  0xe1   :  { %v1389_v44 = vsel %vm458_vm15, 1.0, %v1586_v25  ;;  %v537_v45 = vpop.permute.xlu1 %536  ;;  %v534_v47 = vpop.permute.xlu0 %533 }
  0xe2   :  { %v505_v48 = vadd.f32 %v1389_v44, %v504_v6  ;;  %vm585_vm7 = vcmp.eq.s32.totalorder %v537_v45, %v2251_v43  ;;  %vm584_vm4 = vcmp.eq.s32.totalorder %v534_v47, %v2251_v43  ;;  %1181 = vperm.xlu1 %1560, %v1531_v3   ;;  %v1503_v6 = vld [vmem:[%s2658_s1 + $0x368] sm:$0xff] }
  0xe3   :  { %vm601_vm12 = vmand %vm585_vm7, %vm2749_vm1  ;;  %1025 = vperm.xlu0 %1559, %v1498_v7  }
  0xe4   :  { %v506_v51 = vadd.f32 %v1390_v49, %v505_v48  ;;  %vm600_vm15 = vmand %vm584_vm4, %vm1814_vm0  ;;  %v1409_v53 = vsel %vm601_vm12, 1.0, %v1586_v25  ;;  %v1537_v49 = vld [vmem:[%s2658_s1 + $0x3f0] sm:$0xff] }
  0xe5   :  { %v1408_v55 = vsel %vm600_vm15, 1.0, %v1586_v25  ;;  %v543_v56 = vpop.permute.xlu1 %542  ;;  %v540_v57 = vpop.permute.xlu0 %539 }
  0xe6   :  { %v507_v59 = vrot.slane %v506_v51, 4  ;;  %vm587_vm6 = vcmp.eq.s32.totalorder %v543_v56, %v2251_v43  ;;  %vm586_vm7 = vcmp.eq.s32.totalorder %v540_v57, %v2251_v43  ;;  %1184 = vperm.xlu1 %1560, %v1532_v50   ;;  %v648_v62 = vadd.f32 %v1409_v53, %v1408_v55 }
  0xe7   :  { %vm603_vm1 = vmand %vm587_vm6, %vm1848_vm8  ;;  %1028 = vperm.xlu0 %1559, %v1499_v52  }
  0xe8   :  { %v508_v61 = vadd.f32 %v507_v59, %v506_v51  ;;  %vm602_vm4 = vmand %vm586_vm7, %vm1827_vm2  ;;  %v1411_v10 = vsel %vm603_vm1, 1.0, %v1586_v25  ;;  %v1504_v51 = vld [vmem:[%s2658_s1 + $0x370] sm:$0xff]  ;;  %v1538_v59 = vld [vmem:[%s2658_s1 + $0x3f8] sm:$0xff] }
  0xe9   :  { %v1410_v0 = vsel %vm602_vm4, 1.0, %v1586_v25  ;;  %v549_v1 = vpop.permute.xlu1 %548  ;;  %v546_v5 = vpop.permute.xlu0 %545 }
  0xea   :  { %v509_v8 = vrot.slane %v508_v61, 2  ;;  %v649_v39 = vadd.f32 %v1410_v0, %v648_v62  ;;  %vm589_vm12 = vcmp.eq.s32.totalorder %v549_v1, %v2251_v43  ;;  %vm588_vm15 = vcmp.eq.s32.totalorder %v546_v5, %v2251_v43  ;;  %1187 = vperm.xlu1 %1560, %v1533_v60  }
  0xeb   :  { %vm605_vm6 = vmand %vm589_vm12, %vm1877_vm14  ;;  %1031 = vperm.xlu0 %1559, %v1500_v63   ;;  %vm2750_vm12 = vnez %v2719_v46 }
  0xec   :  { %v510_v13 = vadd.f32 %v509_v8, %v508_v61  ;;  %vm604_vm7 = vmand %vm588_vm15, %vm1865_vm11  ;;  %v650_v14 = vadd.f32 %v1411_v10, %v649_v39  ;;  %v1413_v27 = vsel %vm605_vm6, 1.0, %v1586_v25  ;;  %v1505_v61 = vld [vmem:[%s2658_s1 + $0x378] sm:$0xff]  ;;  %v2368_v8 = vld [vmem:[%s2657_s0 + $0x4] ss:$0 sm:$0xff] }
  0xed   :  { %v1412_v17 = vsel %vm604_vm7, 1.0, %v1586_v25  ;;  %v555_v19 = vpop.permute.xlu1 %554  ;;  %v552_v22 = vpop.permute.xlu0 %551  ;;  %vm2751_vm7 = vnez %v2717_v42 }
  0xee   :  { %v511_v23 = vrot.slane %v510_v13, 1  ;;  %v651_v24 = vadd.f32 %v1412_v17, %v650_v14  ;;  %vm591_vm1 = vcmp.eq.s32.totalorder %v555_v19, %v2251_v43  ;;  %vm590_vm4 = vcmp.eq.s32.totalorder %v552_v22, %v2251_v43  ;;  %1190 = vperm.xlu1 %1560, %v1534_v12  }
  0xef   :  { %vm607_vm15 = vmand %vm591_vm1, %vm2750_vm12  ;;  %1034 = vperm.xlu0 %1559, %v1501_v16  }
  0xf0   :  { %v512_v29 = vadd.f32 %v511_v23, %v510_v13  ;;  %vm606_vm11 = vmand %vm590_vm4, %vm2751_vm7  ;;  %v652_v31 = vadd.f32 %v1413_v27, %v651_v24  ;;  %v1415_v40 = vsel %vm607_vm15, 1.0, %v1586_v25  ;;  %vm2752_vm4 = vnez %v2723_v58 }
  0xf1   :  { %v1414_v33 = vsel %vm606_vm11, 1.0, %v1586_v25  ;;  %v561_v35 = vpop.permute.xlu1 %560  ;;  %v558_v2 = vpop.permute.xlu0 %557  ;;  %vm2753_vm11 = vnez %v2721_v54 }
  0xf2   :  { %513 = vst [vmem:[#allocation2 + $0x2] sm:$0x1] %v512_v29  ;;  %v653_v37 = vadd.f32 %v1414_v33, %v652_v31  ;;  %vm593_vm6 = vcmp.eq.s32.totalorder %v561_v35, %v2251_v43  ;;  %vm592_vm1 = vcmp.eq.s32.totalorder %v558_v2, %v2251_v43  ;;  %1193 = vperm.xlu1 %1560, %v1535_v28  }
  0xf3   :  { %vm609_vm7 = vmand %vm593_vm6, %vm2752_vm4  ;;  %1037 = vperm.xlu0 %1559, %v1502_v32  }
  0xf4   :  { %vm608_vm12 = vmand %vm592_vm1, %vm2753_vm11  ;;  %v654_v3 = vadd.f32 %v1415_v40, %v653_v37  ;;  %v1417_v48 = vsel %vm609_vm7, 1.0, %v1586_v25 }
  0xf5   :  { %v1416_v7 = vsel %vm608_vm12, 1.0, %v1586_v25  ;;  %v567_v44 = vpop.permute.xlu1 %566  ;;  %v564_v45 = vpop.permute.xlu0 %563 }
  0xf6   :  { %v655_v47 = vadd.f32 %v1416_v7, %v654_v3  ;;  %vm595_vm15 = vcmp.eq.s32.totalorder %v567_v44, %v2251_v43  ;;  %vm594_vm6 = vcmp.eq.s32.totalorder %v564_v45, %v2251_v43  ;;  %1196 = vperm.xlu1 %1560, %v1536_v41  }
  0xf7   :  { %vm611_vm1 = vmand %vm595_vm15, %vm2747_vm9  ;;  %1040 = vperm.xlu0 %1559, %v1503_v6  }
  0xf8   :  { %vm610_vm12 = vmand %vm594_vm6, %vm2748_vm3  ;;  %v656_v50 = vadd.f32 %v1417_v48, %v655_v47  ;;  %v1419_v57 = vsel %vm611_vm1, 1.0, %v1586_v25 }
  0xf9   :  { %v1418_v52 = vsel %vm610_vm12, 1.0, %v1586_v25  ;;  %v573_v53 = vpop.permute.xlu1 %572  ;;  %v570_v55 = vpop.permute.xlu0 %569 }
  0xfa   :  { %v657_v56 = vadd.f32 %v1418_v52, %v656_v50  ;;  %vm597_vm7 = vcmp.eq.s32.totalorder %v573_v53, %v2251_v43  ;;  %vm596_vm15 = vcmp.eq.s32.totalorder %v570_v55, %v2251_v43  ;;  %1199 = vperm.xlu1 %1560, %v1537_v49  }
  0xfb   :  { %vm613_vm6 = vmand %vm597_vm7, %vm2742_vm13  ;;  %1043 = vperm.xlu0 %1559, %v1504_v51   ;;  %vm2754_vm13 = vnez %v2735_v38 }
  0xfc   :  { %vm612_vm12 = vmand %vm596_vm15, %vm2743_vm10  ;;  %v658_v60 = vadd.f32 %v1419_v57, %v657_v56  ;;  %v1421_v5 = vsel %vm613_vm6, 1.0, %v1586_v25 }
  0xfd   :  { %v1420_v62 = vsel %vm612_vm12, 1.0, %v1586_v25  ;;  %v579_v63 = vpop.permute.xlu1 %578  ;;  %v576_v0 = vpop.permute.xlu0 %575 }
  0xfe   :  { %v659_v1 = vadd.f32 %v1420_v62, %v658_v60  ;;  %vm599_vm1 = vcmp.eq.s32.totalorder %v579_v63, %v2251_v43  ;;  %vm598_vm7 = vcmp.eq.s32.totalorder %v576_v0, %v2251_v43  ;;  %1202 = vperm.xlu1 %1560, %v1538_v59  }
  0xff   :  { %vm615_vm15 = vmand %vm599_vm1, %vm2754_vm13  ;;  %1046 = vperm.xlu0 %1559, %v1505_v61   ;;  %vm2755_vm1 = vnez %v2707_v18 }
 0x100   :  { %vm614_vm12 = vmand %vm598_vm7, %vm1997_vm5  ;;  %v660_v39 = vadd.f32 %v1421_v5, %v659_v1  ;;  %v1423_v14 = vsel %vm615_vm15, 1.0, %v1586_v25 }
 0x101   :  { %v1422_v10 = vsel %vm614_vm12, 1.0, %v1586_v25  ;;  %v693_v12 = vpop.permute.xlu1 %692  ;;  %v690_v43 = vpop.permute.xlu0 %689 }
 0x102   :  { %v661_v13 = vadd.f32 %v1422_v10, %v660_v39  ;;  %vm741_vm6 = vcmp.eq.s32.totalorder %v693_v12, %v2368_v8  ;;  %vm740_vm10 = vcmp.eq.s32.totalorder %v690_v43, %v2368_v8 }
 0x103   :  { %vm757_vm13 = vmand %vm741_vm6, %vm2755_vm1 }
 0x104   :  { %v662_v16 = vadd.f32 %v1423_v14, %v661_v13  ;;  %vm756_vm3 = vmand %vm740_vm10, %vm1814_vm0  ;;  %v1442_v17 = vsel %vm757_vm13, 1.0, %v1586_v25 }
 0x105   :  { %v1441_v19 = vsel %vm756_vm3, 1.0, %v1586_v25  ;;  %v699_v22 = vpop.permute.xlu1 %698  ;;  %v696_v23 = vpop.permute.xlu0 %695 }
 0x106   :  { %v663_v24 = vrot.slane %v662_v16, 4  ;;  %vm743_vm7 = vcmp.eq.s32.totalorder %v699_v22, %v2368_v8  ;;  %vm742_vm12 = vcmp.eq.s32.totalorder %v696_v23, %v2368_v8  ;;  %v804_v28 = vadd.f32 %v1442_v17, %v1441_v19  ;;  %v2437_v17 = vld [vmem:[%s2657_s0 + $0x5] ss:$0 sm:$0xff] }
 0x107   :  { %vm759_vm15 = vmand %vm743_vm7, %vm1848_vm8  ;;  %vm2756_vm7 = vnez %v2713_v30 }
 0x108   :  { %v664_v27 = vadd.f32 %v663_v24, %v662_v16  ;;  %vm758_vm6 = vmand %vm742_vm12, %vm1827_vm2  ;;  %v1444_v2 = vsel %vm759_vm15, 1.0, %v1586_v25  ;;  %vm2757_vm15 = vnez %v2719_v46 }
 0x109   :  { %v1443_v29 = vsel %vm758_vm6, 1.0, %v1586_v25  ;;  %v705_v31 = vpop.permute.xlu1 %704  ;;  %v702_v32 = vpop.permute.xlu0 %701 }
 0x10a   :  { %v665_v33 = vrot.slane %v664_v27, 2  ;;  %v805_v35 = vadd.f32 %v1443_v29, %v804_v28  ;;  %vm745_vm13 = vcmp.eq.s32.totalorder %v705_v31, %v2368_v8  ;;  %vm744_vm10 = vcmp.eq.s32.totalorder %v702_v32, %v2368_v8 }
 0x10b   :  { %vm761_vm3 = vmand %vm745_vm13, %vm1877_vm14  ;;  %vm2758_vm14 = vnez %v2717_v42 }
 0x10c   :  { %v666_v37 = vadd.f32 %v665_v33, %v664_v27  ;;  %vm760_vm8 = vmand %vm744_vm10, %vm2756_vm7  ;;  %v806_v40 = vadd.f32 %v1444_v2, %v805_v35  ;;  %v1446_v45 = vsel %vm761_vm3, 1.0, %v1586_v25 }
 0x10d   :  { %v1445_v41 = vsel %vm760_vm8, 1.0, %v1586_v25  ;;  %v711_v3 = vpop.permute.xlu1 %710  ;;  %v708_v6 = vpop.permute.xlu0 %707 }
 0x10e   :  { %v667_v7 = vrot.slane %v666_v37, 1  ;;  %v807_v44 = vadd.f32 %v1445_v41, %v806_v40  ;;  %vm747_vm12 = vcmp.eq.s32.totalorder %v711_v3, %v2368_v8  ;;  %vm746_vm6 = vcmp.eq.s32.totalorder %v708_v6, %v2368_v8 }
 0x10f   :  { %vm763_vm13 = vmand %vm747_vm12, %vm2757_vm15 }
 0x110   :  { %v668_v47 = vadd.f32 %v667_v7, %v666_v37  ;;  %vm762_vm10 = vmand %vm746_vm6, %vm2758_vm14  ;;  %v808_v48 = vadd.f32 %v1446_v45, %v807_v44  ;;  %v1448_v53 = vsel %vm763_vm13, 1.0, %v1586_v25 }
 0x111   :  { %v1447_v49 = vsel %vm762_vm10, 1.0, %v1586_v25  ;;  %v717_v50 = vpop.permute.xlu1 %716  ;;  %v714_v51 = vpop.permute.xlu0 %713 }
 0x112   :  { %669 = vst [vmem:[#allocation2 + $0x3] sm:$0x1] %v668_v47  ;;  %v809_v52 = vadd.f32 %v1447_v49, %v808_v48  ;;  %vm749_vm8 = vcmp.eq.s32.totalorder %v717_v50, %v2368_v8  ;;  %vm748_vm7 = vcmp.eq.s32.totalorder %v714_v51, %v2368_v8 }
 0x113   :  { %vm765_vm3 = vmand %vm749_vm8, %vm2752_vm4  ;;  %vm2759_vm8 = vnez %v2725_v4 }
 0x114   :  { %vm764_vm12 = vmand %vm748_vm7, %vm2753_vm11  ;;  %v810_v55 = vadd.f32 %v1448_v53, %v809_v52  ;;  %v1450_v61 = vsel %vm765_vm3, 1.0, %v1586_v25  ;;  %vm2760_vm3 = vnez %v2731_v26 }
 0x115   :  { %v1449_v56 = vsel %vm764_vm12, 1.0, %v1586_v25  ;;  %v723_v57 = vpop.permute.xlu1 %722  ;;  %v720_v59 = vpop.permute.xlu0 %719 }
 0x116   :  { %v811_v60 = vadd.f32 %v1449_v56, %v810_v55  ;;  %vm751_vm6 = vcmp.eq.s32.totalorder %v723_v57, %v2368_v8  ;;  %vm750_vm10 = vcmp.eq.s32.totalorder %v720_v59, %v2368_v8 }
 0x117   :  { %vm767_vm13 = vmand %vm751_vm6, %vm2747_vm9  ;;  %vm2761_vm6 = vnez %v2729_v20 }
 0x118   :  { %vm766_vm4 = vmand %vm750_vm10, %vm2759_vm8  ;;  %v812_v62 = vadd.f32 %v1450_v61, %v811_v60  ;;  %v1452_v39 = vsel %vm767_vm13, 1.0, %v1586_v25  ;;  %vm2762_vm13 = vnez %v2735_v38 }
 0x119   :  { %v1451_v63 = vsel %vm766_vm4, 1.0, %v1586_v25  ;;  %v729_v0 = vpop.permute.xlu1 %728  ;;  %v726_v1 = vpop.permute.xlu0 %725 }
 0x11a   :  { %v813_v5 = vadd.f32 %v1451_v63, %v812_v62  ;;  %vm753_vm7 = vcmp.eq.s32.totalorder %v729_v0, %v2368_v8  ;;  %vm752_vm12 = vcmp.eq.s32.totalorder %v726_v1, %v2368_v8 }
 0x11b   :  { %vm769_vm11 = vmand %vm753_vm7, %vm2760_vm3 }
 0x11c   :  { %vm768_vm9 = vmand %vm752_vm12, %vm2761_vm6  ;;  %v814_v10 = vadd.f32 %v1452_v39, %v813_v5  ;;  %v1454_v16 = vsel %vm769_vm11, 1.0, %v1586_v25 }
 0x11d   :  { %v1453_v12 = vsel %vm768_vm9, 1.0, %v1586_v25  ;;  %v735_v43 = vpop.permute.xlu1 %734  ;;  %v732_v13 = vpop.permute.xlu0 %731 }
 0x11e   :  { %v815_v14 = vadd.f32 %v1453_v12, %v814_v10  ;;  %vm755_vm4 = vcmp.eq.s32.totalorder %v735_v43, %v2368_v8  ;;  %vm754_vm10 = vcmp.eq.s32.totalorder %v732_v13, %v2368_v8 }
 0x11f   :  { %vm771_vm8 = vmand %vm755_vm4, %vm2762_vm13 }
 0x120   :  { %vm770_vm9 = vmand %vm754_vm10, %vm1997_vm5  ;;  %v816_v19 = vadd.f32 %v1454_v16, %v815_v14  ;;  %v1456_v8 = vsel %vm771_vm8, 1.0, %v1586_v25 }
 0x121   :  { %v1455_v22 = vsel %vm770_vm9, 1.0, %v1586_v25  ;;  %v849_v23 = vpop.permute.xlu1 %848  ;;  %v846_v24 = vpop.permute.xlu0 %845  ;;  %vm2763_vm9 = vnez %v2711_v21 }
 0x122   :  { %v817_v27 = vadd.f32 %v1455_v22, %v816_v19  ;;  %vm897_vm7 = vcmp.eq.s32.totalorder %v849_v23, %v2437_v17  ;;  %vm896_vm11 = vcmp.eq.s32.totalorder %v846_v24, %v2437_v17 }
 0x123   :  { %vm913_vm12 = vmand %vm897_vm7, %vm2755_vm1 }
 0x124   :  { %v818_v28 = vadd.f32 %v1456_v8, %v817_v27  ;;  %vm912_vm4 = vmand %vm896_vm11, %vm1814_vm0  ;;  %v1475_v29 = vsel %vm913_vm12, 1.0, %v1586_v25  ;;  %vm2764_vm12 = vnez %v2715_v34 }
 0x125   :  { %v1474_v31 = vsel %vm912_vm4, 1.0, %v1586_v25  ;;  %v855_v32 = vpop.permute.xlu1 %854  ;;  %v852_v35 = vpop.permute.xlu0 %851 }
 0x126   :  { %v819_v33 = vrot.slane %v818_v28, 4  ;;  %vm899_vm10 = vcmp.eq.s32.totalorder %v855_v32, %v2437_v17  ;;  %vm898_vm8 = vcmp.eq.s32.totalorder %v852_v35, %v2437_v17  ;;  %v960_v37 = vadd.f32 %v1475_v29, %v1474_v31 }
 0x127   :  { %vm915_vm5 = vmand %vm899_vm10, %vm2763_vm9  ;;  %vm2765_vm9 = vnez %v2713_v30 }
 0x128   :  { %v820_v2 = vadd.f32 %v819_v33, %v818_v28  ;;  %vm914_vm7 = vmand %vm898_vm8, %vm1827_vm2  ;;  %v1477_v44 = vsel %vm915_vm5, 1.0, %v1586_v25 }
 0x129   :  { %v1476_v40 = vsel %vm914_vm7, 1.0, %v1586_v25  ;;  %v861_v41 = vpop.permute.xlu1 %860  ;;  %v858_v7 = vpop.permute.xlu0 %857 }
 0x12a   :  { %v821_v3 = vrot.slane %v820_v2, 2  ;;  %v961_v6 = vadd.f32 %v1476_v40, %v960_v37  ;;  %vm901_vm11 = vcmp.eq.s32.totalorder %v861_v41, %v2437_v17  ;;  %vm900_vm10 = vcmp.eq.s32.totalorder %v858_v7, %v2437_v17 }
 0x12b   :  { %vm917_vm4 = vmand %vm901_vm11, %vm2764_vm12 }
 0x12c   :  { %v822_v45 = vadd.f32 %v821_v3, %v820_v2  ;;  %vm916_vm0 = vmand %vm900_vm10, %vm2765_vm9  ;;  %v962_v47 = vadd.f32 %v1477_v44, %v961_v6  ;;  %v1479_v53 = vsel %vm917_vm4, 1.0, %v1586_v25  ;;  %vm2766_vm4 = vnez %v2723_v58 }
 0x12d   :  { %v1478_v48 = vsel %vm916_vm0, 1.0, %v1586_v25  ;;  %v867_v49 = vpop.permute.xlu1 %866  ;;  %v864_v52 = vpop.permute.xlu0 %863 }
 0x12e   :  { %v823_v50 = vrot.slane %v822_v45, 1  ;;  %v963_v51 = vadd.f32 %v1478_v48, %v962_v47  ;;  %vm903_vm8 = vcmp.eq.s32.totalorder %v867_v49, %v2437_v17  ;;  %vm902_vm7 = vcmp.eq.s32.totalorder %v864_v52, %v2437_v17 }
 0x12f   :  { %vm919_vm5 = vmand %vm903_vm8, %vm2757_vm15  ;;  %vm2767_vm15 = vnez %v2721_v54 }
 0x130   :  { %v824_v55 = vadd.f32 %v823_v50, %v822_v45  ;;  %vm918_vm11 = vmand %vm902_vm7, %vm2758_vm14  ;;  %v964_v56 = vadd.f32 %v1479_v53, %v963_v51  ;;  %v1481_v62 = vsel %vm919_vm5, 1.0, %v1586_v25  ;;  %vm2768_vm5 = vnez %v2727_v9  ;;  %v2510_v53 = vld [vmem:[%s2657_s0 + $0x7] ss:$0 sm:$0xff] }
 0x131   :  { %v1480_v57 = vsel %vm918_vm11, 1.0, %v1586_v25  ;;  %v873_v59 = vpop.permute.xlu1 %872  ;;  %v870_v61 = vpop.permute.xlu0 %869 }
 0x132   :  { %825 = vst [vmem:[#allocation2 + $0x4] sm:$0x1] %v824_v55  ;;  %v965_v60 = vadd.f32 %v1480_v57, %v964_v56  ;;  %vm905_vm0 = vcmp.eq.s32.totalorder %v873_v59, %v2437_v17  ;;  %vm904_vm8 = vcmp.eq.s32.totalorder %v870_v61, %v2437_v17  ;;  %v2516_v55 = vld [vmem:[%s2657_s0 + $0x6] ss:$0 sm:$0xff]  ;;  %s1587_s0 = smov [#allocation2]  }
 0x133   :  { %vm921_vm10 = vmand %vm905_vm0, %vm2766_vm4  ;;  %vm2769_vm4 = vnez %v2725_v4  ;;  %s1300_s28 = sshll.u32 %s1587_s0, 4  ;;  %s1301_s28 = int_to_ptr.vmem [resolvable:$true] %s1300_s28 }
 0x134   :  { %vm920_vm12 = vmand %vm904_vm8, %vm2767_vm15  ;;  %v966_v63 = vadd.f32 %v1481_v62, %v965_v60  ;;  %v1483_v10 = vsel %vm921_vm10, 1.0, %v1586_v25  ;;  %s1561_s29 = scalar_lea.vmem %s1301_s28, 128  ;;  %p1566_p1 = scmp.lt.s32.totalorder %s1301_s28, %s1301_s28 }
 0x135   :  { %v1482_v0 = vsel %vm920_vm12, 1.0, %v1586_v25  ;;  %v879_v1 = vpop.permute.xlu1 %878  ;;  %v876_v39 = vpop.permute.xlu0 %875  ;;  %p1562_p0 = scmp.ne.s32.totalorder %s1301_s28, %s1561_s29  ;;  %p1567_p2 = scmp.lt.s32.totalorder %s1561_s29, %s1561_s29 }
 0x136   :  { %v967_v5 = vadd.f32 %v1482_v0, %v966_v63  ;;  %vm907_vm7 = vcmp.eq.s32.totalorder %v879_v1, %v2437_v17  ;;  %vm906_vm0 = vcmp.eq.s32.totalorder %v876_v39, %v2437_v17 }
 0x137   :  { %vm923_vm11 = vmand %vm907_vm7, %vm2768_vm5  ;;  %p1568_p3 = por %p1567_p2, %p1566_p1 }
 0x138   :  { %vm922_vm14 = vmand %vm906_vm0, %vm2769_vm4  ;;  %v968_v12 = vadd.f32 %v1483_v10, %v967_v5  ;;  %v1485_v19 = vsel %vm923_vm11, 1.0, %v1586_v25 }
 0x139   :  { %v1484_v43 = vsel %vm922_vm14, 1.0, %v1586_v25  ;;  %v885_v13 = vpop.permute.xlu1 %884  ;;  %v882_v16 = vpop.permute.xlu0 %881  ;;  %p1569_p4 = pnand %p1568_p3, %p1562_p0 }
 0x13a   :  { %v969_v14 = vadd.f32 %v1484_v43, %v968_v12  ;;  %vm909_vm12 = vcmp.eq.s32.totalorder %v885_v13, %v2437_v17  ;;  %vm908_vm8 = vcmp.eq.s32.totalorder %v882_v16, %v2437_v17 }
 0x13b   :  { %vm925_vm10 = vmand %vm909_vm12, %vm2760_vm3  ;;  %vm2770_vm12 = vnez %v2733_v36 }
 0x13c   :  { %vm924_vm7 = vmand %vm908_vm8, %vm2761_vm6  ;;  %v970_v22 = vadd.f32 %v1485_v19, %v969_v14  ;;  %v1487_v28 = vsel %vm925_vm10, 1.0, %v1586_v25 }
 0x13d   :  { %v1486_v23 = vsel %vm924_vm7, 1.0, %v1586_v25  ;;  %v891_v24 = vpop.permute.xlu1 %890  ;;  %v888_v8 = vpop.permute.xlu0 %887 }
 0x13e   :  { %v971_v27 = vadd.f32 %v1486_v23, %v970_v22  ;;  %vm911_vm14 = vcmp.eq.s32.totalorder %v891_v24, %v2437_v17  ;;  %vm910_vm0 = vcmp.eq.s32.totalorder %v888_v8, %v2437_v17 }
 0x13f   :  { %vm927_vm11 = vmand %vm911_vm14, %vm2762_vm13 }
 0x140   :  { %vm926_vm3 = vmand %vm910_vm0, %vm2770_vm12  ;;  %v972_v29 = vadd.f32 %v1487_v28, %v971_v27  ;;  %v1489_v2 = vsel %vm927_vm11, 1.0, %v1586_v25  ;;  %vm2771_vm11 = vnez %v2703_v11 }
 0x141   :  { %v1488_v31 = vsel %vm926_vm3, 1.0, %v1586_v25  ;;  %v1005_v32 = vpop.permute.xlu1 %1004  ;;  %v1002_v35 = vpop.permute.xlu0 %1001 }
 0x142   :  { %v973_v33 = vadd.f32 %v1488_v31, %v972_v29  ;;  %vm1053_vm7 = vcmp.eq.s32.totalorder %v1005_v32, %v2516_v55  ;;  %vm1052_vm14 = vcmp.eq.s32.totalorder %v1002_v35, %v2516_v55 }
 0x143   :  { %vm1069_vm12 = vmand %vm1053_vm7, %vm2755_vm1 }
 0x144   :  { %v974_v37 = vadd.f32 %v1489_v2, %v973_v33  ;;  %v1508_v18 = vsel %vm1069_vm12, 1.0, %v1586_v25 }
 0x145   :  { %v1011_v40 = vpop.permute.xlu1 %1010  ;;  %v1008_v3 = vpop.permute.xlu0 %1007 }
 0x146   :  { %v975_v41 = vrot.slane %v974_v37, 4  ;;  %vm1054_vm6 = vcmp.eq.s32.totalorder %v1008_v3, %v2516_v55 }
 0x148   :  { %v976_v6 = vadd.f32 %v975_v41, %v974_v37 }
 0x149   :  { %v1158_v7 = vpop.permute.xlu1 %1157  ;;  %v1014_v45 = vpop.permute.xlu0 %1013 }
 0x14a   :  { %v977_v44 = vrot.slane %v976_v6, 2  ;;  %vm1208_vm10 = vcmp.eq.s32.totalorder %v1158_v7, %v2510_v53 }
 0x14b   :  { %vm1224_vm0 = vmand %vm1208_vm10, %vm2771_vm11 }
 0x14c   :  { %v978_v17 = vadd.f32 %v977_v44, %v976_v6  ;;  %v1540_v62 = vsel %vm1224_vm0, 1.0, %v1586_v25 }
 0x14d   :  { %v1164_v47 = vpop.permute.xlu1 %1163  ;;  %v1161_v49 = vpop.permute.xlu0 %1160 }
 0x14e   :  { %v979_v48 = vrot.slane %v978_v17, 1  ;;  %vm1209_vm3 = vcmp.eq.s32.totalorder %v1161_v49, %v2510_v53  ;;  %vm1210_vm13 = vcmp.eq.s32.totalorder %v1164_v47, %v2510_v53 }
 0x14f   :  { %vm1225_vm8 = vmand %vm1209_vm3, %vm2755_vm1  ;;  %vm2772_vm1 = vnez %v2711_v21 }
 0x150   :  { %v980_v50 = vadd.f32 %v979_v48, %v978_v17  ;;  %v1541_v60 = vsel %vm1225_vm8, 1.0, %v1586_v25  ;;  %vm1068_vm3 = vmand %vm1052_vm14, %vm2771_vm11  ;;  %vm1055_vm14 = vcmp.eq.s32.totalorder %v1011_v40, %v2516_v55 }
 0x151   :  { %v1170_v51 = vpop.permute.xlu1 %1169  ;;  %vm1226_vm10 = vmand %vm1210_vm13, %vm1827_vm2  ;;  %v1272_v63 = vadd.f32 %v1541_v60, %v1540_v62  ;;  %v1507_v5 = vsel %vm1068_vm3, 1.0, %v1586_v25 }
 0x152   :  { %981 = vst [vmem:[#allocation2 + $0x5] sm:$0x1] %v980_v50  ;;  %v1167_v52 = vpop.permute.xlu0 %1166  ;;  %vm1070_vm8 = vmand %vm1054_vm6, %vm1827_vm2  ;;  %v1542_v11 = vsel %vm1226_vm10, 1.0, %v1586_v25  ;;  %v1116_v43 = vadd.f32 %v1508_v18, %v1507_v5  ;;  %vm1212_vm13 = vcmp.eq.s32.totalorder %v1170_v51, %v2510_v53  ;;  %vm1056_vm2 = vcmp.eq.s32.totalorder %v1014_v45, %v2516_v55 }
 0x153   :  { %vm1211_vm5 = vcmp.eq.s32.totalorder %v1167_v52, %v2510_v53  ;;  %v1509_v39 = vsel %vm1070_vm8, 1.0, %v1586_v25  ;;  %v1273_v10 = vadd.f32 %v1542_v11, %v1272_v63  ;;  %vm1071_vm6 = vmand %vm1055_vm14, %vm2772_vm1  ;;  %vm2773_vm10 = vnez %v2715_v34 }
 0x154   :  { %vm1227_vm7 = vmand %vm1211_vm5, %vm2772_vm1  ;;  %v1117_v14 = vadd.f32 %v1509_v39, %v1116_v43  ;;  %v1510_v23 = vsel %vm1071_vm6, 1.0, %v1586_v25 }
 0x155   :  { %v1173_v56 = vpop.permute.xlu1 %1172  ;;  %v1543_v15 = vsel %vm1227_vm7, 1.0, %v1586_v25  ;;  %vm1228_vm12 = vmand %vm1212_vm13, %vm2765_vm9 }
 0x156   :  { %v1017_v57 = vpop.permute.xlu0 %1016  ;;  %vm1213_vm5 = vcmp.eq.s32.totalorder %v1173_v56, %v2510_v53  ;;  %v1274_v16 = vadd.f32 %v1543_v15, %v1273_v10  ;;  %vm1072_vm0 = vmand %vm1056_vm2, %vm2765_vm9  ;;  %v1118_v21 = vadd.f32 %v1510_v23, %v1117_v14  ;;  %v1544_v24 = vsel %vm1228_vm12, 1.0, %v1586_v25 }
 0x157   :  { %vm1057_vm11 = vcmp.eq.s32.totalorder %v1017_v57, %v2516_v55  ;;  %vm1229_vm8 = vmand %vm1213_vm5, %vm2773_vm10  ;;  %v1511_v30 = vsel %vm1072_vm0, 1.0, %v1586_v25  ;;  %vm2774_vm9 = vnez %v2717_v42  ;;  %vm2775_vm12 = vnez %v2719_v46 }
 0x158   :  { %vm1073_vm7 = vmand %vm1057_vm11, %vm2773_vm10  ;;  %v1275_v27 = vadd.f32 %v1544_v24, %v1274_v16  ;;  %v1545_v28 = vsel %vm1229_vm8, 1.0, %v1586_v25  ;;  %v1119_v31 = vadd.f32 %v1511_v30, %v1118_v21 }
 0x159   :  { %v1176_v59 = vpop.permute.xlu1 %1175  ;;  %v1512_v29 = vsel %vm1073_vm7, 1.0, %v1586_v25 }
 0x15a   :  { %v1020_v61 = vpop.permute.xlu0 %1019  ;;  %vm1214_vm3 = vcmp.eq.s32.totalorder %v1176_v59, %v2510_v53  ;;  %v1276_v42 = vadd.f32 %v1545_v28, %v1275_v27  ;;  %v1120_v2 = vadd.f32 %v1512_v29, %v1119_v31 }
 0x15b   :  { %vm1058_vm1 = vcmp.eq.s32.totalorder %v1020_v61, %v2516_v55  ;;  %vm1230_vm13 = vmand %vm1214_vm3, %vm2774_vm9 }
 0x15c   :  { %vm1074_vm6 = vmand %vm1058_vm1, %vm2774_vm9  ;;  %v1546_v32 = vsel %vm1230_vm13, 1.0, %v1586_v25  ;;  %vm2776_vm9 = vnez %v2723_v58 }
 0x15d   :  { %v1179_v0 = vpop.permute.xlu1 %1178  ;;  %v1513_v33 = vsel %vm1074_vm6, 1.0, %v1586_v25  ;;  %v1277_v40 = vadd.f32 %v1546_v32, %v1276_v42 }
 0x15e   :  { %v1023_v1 = vpop.permute.xlu0 %1022  ;;  %vm1215_vm14 = vcmp.eq.s32.totalorder %v1179_v0, %v2510_v53  ;;  %v1121_v3 = vadd.f32 %v1513_v33, %v1120_v2 }
 0x15f   :  { %vm1059_vm2 = vcmp.eq.s32.totalorder %v1023_v1, %v2516_v55  ;;  %vm1231_vm11 = vmand %vm1215_vm14, %vm2775_vm12 }
 0x160   :  { %vm1075_vm3 = vmand %vm1059_vm2, %vm2775_vm12  ;;  %v1547_v37 = vsel %vm1231_vm11, 1.0, %v1586_v25 }
 0x161   :  { %v1182_v12 = vpop.permute.xlu1 %1181  ;;  %v1514_v41 = vsel %vm1075_vm3, 1.0, %v1586_v25  ;;  %v1278_v54 = vadd.f32 %v1547_v37, %v1277_v40  ;;  %vm2777_vm3 = vnez %v2727_v9 }
 0x162   :  { %v1026_v13 = vpop.permute.xlu0 %1025  ;;  %vm1216_vm5 = vcmp.eq.s32.totalorder %v1182_v12, %v2510_v53  ;;  %v1122_v45 = vadd.f32 %v1514_v41, %v1121_v3 }
 0x163   :  { %vm1060_vm0 = vcmp.eq.s32.totalorder %v1026_v13, %v2516_v55  ;;  %vm1232_vm8 = vmand %vm1216_vm5, %vm2767_vm15 }
 0x164   :  { %vm1076_vm7 = vmand %vm1060_vm0, %vm2767_vm15  ;;  %v1548_v6 = vsel %vm1232_vm8, 1.0, %v1586_v25 }
 0x165   :  { %v1185_v19 = vpop.permute.xlu1 %1184  ;;  %v1515_v7 = vsel %vm1076_vm7, 1.0, %v1586_v25  ;;  %v1279_v47 = vadd.f32 %v1548_v6, %v1278_v54 }
 0x166   :  { %v1029_v22 = vpop.permute.xlu0 %1028  ;;  %vm1217_vm10 = vcmp.eq.s32.totalorder %v1185_v19, %v2510_v53  ;;  %v1123_v49 = vadd.f32 %v1515_v7, %v1122_v45 }
 0x167   :  { %vm1061_vm1 = vcmp.eq.s32.totalorder %v1029_v22, %v2516_v55  ;;  %vm1233_vm13 = vmand %vm1217_vm10, %vm2776_vm9 }
 0x168   :  { %vm1077_vm6 = vmand %vm1061_vm1, %vm2776_vm9  ;;  %v1549_v17 = vsel %vm1233_vm13, 1.0, %v1586_v25  ;;  %vm2779_vm13 = vnez %v2731_v26 }
 0x169   :  { %v1188_v8 = vpop.permute.xlu1 %1187  ;;  %v1516_v48 = vsel %vm1077_vm6, 1.0, %v1586_v25  ;;  %v1280_v51 = vadd.f32 %v1549_v17, %v1279_v47 }
 0x16a   :  { %v1032_v34 = vpop.permute.xlu0 %1031  ;;  %vm1218_vm14 = vcmp.eq.s32.totalorder %v1188_v8, %v2510_v53  ;;  %v1124_v56 = vadd.f32 %v1516_v48, %v1123_v49 }
 0x16b   :  { %vm1062_vm2 = vcmp.eq.s32.totalorder %v1032_v34, %v2516_v55  ;;  %vm1234_vm15 = vmand %vm1218_vm14, %vm2769_vm4 }
 0x16c   :  { %vm1078_vm11 = vmand %vm1062_vm2, %vm2769_vm4  ;;  %v1550_v50 = vsel %vm1234_vm15, 1.0, %v1586_v25  ;;  %vm2778_vm4 = vnez %v2729_v20 }
 0x16d   :  { %v1191_v35 = vpop.permute.xlu1 %1190  ;;  %v1517_v4 = vsel %vm1078_vm11, 1.0, %v1586_v25  ;;  %v1281_v60 = vadd.f32 %v1550_v50, %v1280_v51 }
 0x16e   :  { %v1035_v46 = vpop.permute.xlu0 %1034  ;;  %vm1219_vm5 = vcmp.eq.s32.totalorder %v1191_v35, %v2510_v53  ;;  %v1125_v61 = vadd.f32 %v1517_v4, %v1124_v56 }
 0x16f   :  { %vm1063_vm12 = vcmp.eq.s32.totalorder %v1035_v46, %v2516_v55  ;;  %vm1235_vm10 = vmand %vm1219_vm5, %vm2777_vm3 }
 0x170   :  { %vm1079_vm1 = vmand %vm1063_vm12, %vm2777_vm3  ;;  %v1551_v57 = vsel %vm1235_vm10, 1.0, %v1586_v25  ;;  %vm2780_vm12 = vnez %v2733_v36 }
 0x171   :  { %v1194_v44 = vpop.permute.xlu1 %1193  ;;  %v1518_v9 = vsel %vm1079_vm1, 1.0, %v1586_v25  ;;  %v1282_v63 = vadd.f32 %v1551_v57, %v1281_v60 }
 0x172   :  { %vm1220_vm0 = vcmp.eq.s32.totalorder %v1194_v44, %v2510_v53  ;;  %v1038_v58 = vpop.permute.xlu0 %1037  ;;  %v1126_v1 = vadd.f32 %v1518_v9, %v1125_v61 }
 0x173   :  { %vm1064_vm8 = vcmp.eq.s32.totalorder %v1038_v58, %v2516_v55  ;;  %vm1236_vm7 = vmand %vm1220_vm0, %vm2778_vm4 }
 0x174   :  { %vm1080_vm14 = vmand %vm1064_vm8, %vm2778_vm4  ;;  %v1552_v62 = vsel %vm1236_vm7, 1.0, %v1586_v25  ;;  %vm2781_vm8 = vnez %v2735_v38 }
 0x175   :  { %v1197_v52 = vpop.permute.xlu1 %1196  ;;  %v1519_v20 = vsel %vm1080_vm14, 1.0, %v1586_v25  ;;  %v1283_v11 = vadd.f32 %v1552_v62, %v1282_v63 }
 0x176   :  { %vm1221_vm9 = vcmp.eq.s32.totalorder %v1197_v52, %v2510_v53  ;;  %v1041_v59 = vpop.permute.xlu0 %1040  ;;  %v1127_v26 = vadd.f32 %v1519_v20, %v1126_v1 }
 0x177   :  { %vm1237_vm2 = vmand %vm1221_vm9, %vm2779_vm13  ;;  %vm1065_vm6 = vcmp.eq.s32.totalorder %v1041_v59, %v2516_v55 }
 0x178   :  { %vm1081_vm5 = vmand %vm1065_vm6, %vm2779_vm13  ;;  %v1553_v18 = vsel %vm1237_vm2, 1.0, %v1586_v25 }
 0x179   :  { %v1200_v0 = vpop.permute.xlu1 %1199  ;;  %v1520_v39 = vsel %vm1081_vm5, 1.0, %v1586_v25  ;;  %v1284_v12 = vadd.f32 %v1553_v18, %v1283_v11 }
 0x17a   :  { %vm1222_vm15 = vcmp.eq.s32.totalorder %v1200_v0, %v2510_v53  ;;  %v1044_v5 = vpop.permute.xlu0 %1043  ;;  %v1128_v13 = vadd.f32 %v1520_v39, %v1127_v26 }
 0x17b   :  { %vm1238_vm11 = vmand %vm1222_vm15, %vm2780_vm12  ;;  %vm1066_vm0 = vcmp.eq.s32.totalorder %v1044_v5, %v2516_v55 }
 0x17c   :  { %v1554_v10 = vsel %vm1238_vm11, 1.0, %v1586_v25  ;;  %vm1082_vm3 = vmand %vm1066_vm0, %vm2780_vm12 }
 0x17d   :  { %v1521_v43 = vsel %vm1082_vm3, 1.0, %v1586_v25  ;;  %v1203_v15 = vpop.permute.xlu1 %1202  ;;  %v1285_v16 = vadd.f32 %v1554_v10, %v1284_v12 }
 0x17e   :  { %vm1223_vm10 = vcmp.eq.s32.totalorder %v1203_v15, %v2510_v53  ;;  %v1047_v14 = vpop.permute.xlu0 %1046  ;;  %v1129_v19 = vadd.f32 %v1521_v43, %v1128_v13 }
 0x17f   :  { %vm1239_vm1 = vmand %vm1223_vm10, %vm2781_vm8  ;;  %vm1067_vm4 = vcmp.eq.s32.totalorder %v1047_v14, %v2516_v55 }
 0x180   :  { %v1555_v22 = vsel %vm1239_vm1, 1.0, %v1586_v25  ;;  %vm1083_vm7 = vmand %vm1067_vm4, %vm2781_vm8 }
 0x181   :  { %v1286_v36 = vadd.f32 %v1555_v22, %v1285_v16  ;;  %v1522_v23 = vsel %vm1083_vm7, 1.0, %v1586_v25 }
 0x182   :  { %v1130_v21 = vadd.f32 %v1522_v23, %v1129_v19 }
 0x183   :  { %v1287_v24 = vrot.slane %v1286_v36, 4 }
 0x184   :  { %v1131_v30 = vrot.slane %v1130_v21, 4 }
 0x185   :  { %v1288_v53 = vadd.f32 %v1287_v24, %v1286_v36 }
 0x186   :  { %v1132_v27 = vadd.f32 %v1131_v30, %v1130_v21 }
 0x187   :  { %v1289_v8 = vrot.slane %v1288_v53, 2 }
 0x188   :  { %v1133_v28 = vrot.slane %v1132_v27, 2 }
 0x189   :  { %v1290_v34 = vadd.f32 %v1289_v8, %v1288_v53 }
 0x18a   :  { %v1134_v29 = vadd.f32 %v1133_v28, %v1132_v27 }
 0x18b   :  { %v1291_v31 = vrot.slane %v1290_v34, 1 }
 0x18c   :  { %v1135_v55 = vrot.slane %v1134_v29, 1 }
 0x18d   :  { %v1292_v32 = vadd.f32 %v1291_v31, %v1290_v34 }
 0x18e   :  { %v1136_v42 = vadd.f32 %v1135_v55, %v1134_v29 }
 0x18f   :  { %1293 = vst [vmem:[#allocation2 + $0x7] sm:$0x1] %v1292_v32 }
 0x190   :  { %1137 = vst [vmem:[#allocation2 + $0x6] sm:$0x1] %v1136_v42 }
 0x191   :  { %1572 = shalt.err (!%p1569_p4)
}
 0x192   :  { %s1573_s4 = scalar_lea.hbm %s2659_s2, 128 }
 0x193   :  { %p1574_p5 = scmp.ne.s32.totalorder %s2659_s2, %s1573_s4  ;;  %p1577_p6 = scmp.lt.u32.totalorder %s1573_s4, %s2659_s2 }
 0x195   :  { %p1579_p7 = pnand %p1577_p6, %p1574_p5 }
 0x197   :  { %1582 = shalt.err (!%p1579_p7)
}
 0x198   :  { %1303 = dma.vmem_to_hbm [thread:$0]  %s1301_s28, 128, %s2659_s2, [#allocation3]  }
 0x199   :  { %1583 = dma.done.wait [#allocation3], 128  }
 0x19a   :  { %1584 = vsyncadd [#allocation3], 4294967168 }
 0x19b   :  { %1307 = vsyncpa [#allocation3], 1 }

</bundles_post_ra>
